<compile_context>
chip_gen: v7x
topology: tpu7x:2x2x1
jax: 0.10.0
libtpu: 0.0.40
codegen_flags: <defaults>
</compile_context>

<pallas_src>
import math
import numpy as np

import jax
import jax.numpy as jnp
from jax.experimental import pallas as pl
from jax.experimental.pallas import tpu as pltpu

LN_EPS = 1e-5
SQRT1_2 = 0.7071067811865476


def _gelu_exact(x):
    # exact (erf-based) GELU, matching torch.nn.GELU()
    return 0.5 * x * (1.0 + jax.lax.erf(x * SQRT1_2))


def _layernorm_cf(v, g, b):
    """LayerNorm over the channel axis (axis=1) of a (B, C, N) slab."""
    mu = jnp.mean(v, axis=1, keepdims=True)
    var = jnp.mean(v * v, axis=1, keepdims=True) - mu * mu   # one-pass var
    return (v - mu) * jax.lax.rsqrt(var + LN_EPS) * g[None] + b[None]


# ----------------------------- Pallas kernel ------------------------------ #
def block_kernel(x_ref, g1_ref, be1_ref, g2_ref, be2_ref,
                 fcat_ref, gcat_ref, wre_ref, wim_ref,
                 w1t_ref, b1_ref, w2t_ref, b2_ref, o_ref):
    x = x_ref[...]                          # (B, C, N) f32, channels-first
    B, C, N = x.shape
    Wfp = wre_ref.shape[1]                  # 128-padded number of rfft2 bins

    # --- norm1 (over channels) ---
    xn = _layernorm_cf(x, g1_ref[...], be1_ref[...])

    # --- GlobalFilter: rfft2 / complex weight / irfft2 as 2 real matmuls ---
    # forward DFT: (B*C, N) @ (N, 2*Wfp) -> [re | im], both halves 128-aligned
    xf = jnp.dot(xn.reshape(B * C, N).astype(jnp.bfloat16), fcat_ref[...],
                 preferred_element_type=jnp.float32)
    xf = xf.reshape(B, C, 2 * Wfp)
    xre = xf[:, :, :Wfp]
    xim = xf[:, :, Wfp:]
    wre = wre_ref[...][None]                # (1, C, Wfp), kept f32 on the VPU
    wim = wim_ref[...][None]
    yre = xre * wre - xim * wim
    yim = xre * wim + xim * wre
    y = jnp.concatenate([yre, yim], axis=-1).reshape(B * C, 2 * Wfp)
    # inverse DFT: (B*C, 2*Wfp) @ (2*Wfp, N) -> (B*C, N)
    filt = jnp.dot(y.astype(jnp.bfloat16), gcat_ref[...],
                   preferred_element_type=jnp.float32).reshape(B, C, N)

    # --- norm2 + Mlp (fc1 -> GELU -> fc2), channels-first, per batch ---
    h2 = _layernorm_cf(filt, g2_ref[...], be2_ref[...]).astype(jnp.bfloat16)
    w1t = w1t_ref[...]                      # (H, C) bf16
    w2t = w2t_ref[...]                      # (C, H) bf16
    b1 = b1_ref[...]                        # (H, 1) f32
    b2 = b2_ref[...]                        # (C, 1) f32
    for bi in range(B):                     # B is tiny & static -> unrolled
        hid = jnp.dot(w1t, h2[bi], preferred_element_type=jnp.float32) + b1
        hid = _gelu_exact(hid)
        mlp = jnp.dot(w2t, hid.astype(jnp.bfloat16),
                      preferred_element_type=jnp.float32) + b2
        o_ref[bi] = x[bi] + mlp             # residual; lane-dense (C, N) store


# ------------------------- DFT operator construction ---------------------- #
def make_filter_matrices(a, b):
    """Real matrices implementing ortho rfft2 (F) and ortho irfft2 (G)."""
    wf = b // 2 + 1
    n1 = np.arange(a)
    n2 = np.arange(b)
    k1 = np.arange(a)
    k2 = np.arange(wf)

    ang_a = 2.0 * np.pi * np.outer(k1, n1) / a               # (a, a)
    ang_b = 2.0 * np.pi * np.outer(k2, n2) / b               # (wf, b)
    A_r = np.cos(ang_a) / math.sqrt(a)
    A_i = -np.sin(ang_a) / math.sqrt(a)
    B_r = np.cos(ang_b) / math.sqrt(b)
    B_i = -np.sin(ang_b) / math.sqrt(b)
    # forward rfft2 (flattened spatial index n1*b+n2 -> k1*wf+k2)
    F_re = np.kron(A_r, B_r) - np.kron(A_i, B_i)             # (a*wf, a*b)
    F_im = np.kron(A_r, B_i) + np.kron(A_i, B_r)

    # inverse: complex ifft along axis a, then C2R irfft along axis b
    IA_r = np.cos(ang_a) / math.sqrt(a)
    IA_i = np.sin(ang_a) / math.sqrt(a)
    mult = np.full((wf,), 2.0)
    mult[0] = 1.0
    if b % 2 == 0:
        mult[-1] = 1.0                                       # Nyquist bin
    ang_c = 2.0 * np.pi * np.outer(n2, k2) / b               # (b, wf)
    C_m = mult[None, :] * np.cos(ang_c) / math.sqrt(b)
    S_m = -mult[None, :] * np.sin(ang_c) / math.sqrt(b)
    G_re = np.kron(IA_r, C_m) + np.kron(IA_i, S_m)           # (a*b, a*wf)
    G_im = np.kron(IA_r, S_m) - np.kron(IA_i, C_m)

    return (F_re.astype(np.float32), F_im.astype(np.float32),
            G_re.astype(np.float32), G_im.astype(np.float32))


def prepare_block_params(a, b, dim, complex_weight,
                         g1, be1, g2, be2, W1, b1, W2, b2):
    """Host-side packing into the kernel's channels-first / bf16 layout."""
    wf = b // 2 + 1
    Wf = a * wf
    Wfp = int(math.ceil(Wf / 128.0)) * 128      # lane-aligned re/im halves
    N = a * b

    F_re, F_im, G_re, G_im = make_filter_matrices(a, b)
    FcatT = np.zeros((N, 2 * Wfp), np.float32)  # [re | im] forward operator
    FcatT[:, :Wf] = F_re.T
    FcatT[:, Wfp:Wfp + Wf] = F_im.T
    GcatT = np.zeros((2 * Wfp, N), np.float32)  # [re ; im] inverse operator
    GcatT[:Wf, :] = G_re.T
    GcatT[Wfp:Wfp + Wf, :] = G_im.T

    cw = np.asarray(complex_weight, np.float32).reshape(Wf, dim, 2)
    wre = np.zeros((dim, Wfp), np.float32)
    wim = np.zeros((dim, Wfp), np.float32)
    wre[:, :Wf] = cw[..., 0].T
    wim[:, :Wf] = cw[..., 1].T

    bf16 = jnp.bfloat16
    return (
        jnp.asarray(g1, jnp.float32).reshape(dim, 1),
        jnp.asarray(be1, jnp.float32).reshape(dim, 1),
        jnp.asarray(g2, jnp.float32).reshape(dim, 1),
        jnp.asarray(be2, jnp.float32).reshape(dim, 1),
        jnp.asarray(FcatT, bf16),                  # (N, 2*Wfp)
        jnp.asarray(GcatT, bf16),                  # (2*Wfp, N)
        jnp.asarray(wre, jnp.float32),             # (C, Wfp)
        jnp.asarray(wim, jnp.float32),             # (C, Wfp)
        jnp.asarray(W1, jnp.float32).T.astype(bf16),   # (H, C)
        jnp.asarray(b1, jnp.float32).reshape(-1, 1),   # (H, 1)
        jnp.asarray(W2, jnp.float32).T.astype(bf16),   # (C, H)
        jnp.asarray(b2, jnp.float32).reshape(-1, 1),   # (C, 1)
    )


# ------------------------------ wrapper ----------------------------------- #
def block_forward(x, kparams):
    """x: (B, N, C) float32 -> (B, N, C) float32."""
    (g1, be1, g2, be2, FcatT, GcatT, wre, wim, W1T, b1c, W2T, b2c) = kparams
    B, N, C = x.shape

    # layout plumbing: channels-first slab so tokens sit on the lane axis
    x_cf = jnp.transpose(x, (0, 2, 1))          # (B, C, N)

    def full_spec(arr):
        zeros = (0,) * arr.ndim
        return pl.BlockSpec(arr.shape, lambda i, z=zeros: z)

    args = (x_cf, g1, be1, g2, be2, FcatT, GcatT, wre, wim,
            W1T, b1c, W2T, b2c)

    out_cf = pl.pallas_call(
        block_kernel,
        out_shape=jax.ShapeDtypeStruct((B, C, N), x.dtype),
        grid=(1,),                               # single fused step
        in_specs=[full_spec(a) for a in args],
        out_specs=pl.BlockSpec((B, C, N), lambda i: (0, 0, 0)),
        compiler_params=pltpu.CompilerParams(
            dimension_semantics=("arbitrary",)),
    )(*args)

    return jnp.transpose(out_cf, (0, 2, 1))      # back to (B, N, C)


# ---------------------------- pure-JAX reference --------------------------- #
def block_reference(x, a, b, g1, be1, g2, be2, Wc, W1, b1, W2, b2):
    hi = jax.lax.Precision.HIGHEST

    def ln(v, g, be):
        mu = jnp.mean(v, axis=-1, keepdims=True)
        var = jnp.mean((v - mu) ** 2, axis=-1, keepdims=True)
        return (v - mu) * jax.lax.rsqrt(var + LN_EPS) * g + be

    Bsz, N, C = x.shape
    xn = ln(x, g1, be1)
    xs = xn.reshape(Bsz, a, b, C).astype(jnp.float32)
    Xf = jnp.fft.rfft2(xs, axes=(1, 2), norm="ortho")
    Xf = Xf * (Wc[..., 0] + 1j * Wc[..., 1])
    ys = jnp.fft.irfft2(Xf, s=(a, b), axes=(1, 2),
                        norm="ortho").reshape(Bsz, N, C)
    h2 = ln(ys, g2, be2)
    hid = jnp.matmul(h2, W1, precision=hi) + b1
    hid = _gelu_exact(hid)
    mlp = jnp.matmul(hid, W2, precision=hi) + b2
    return x + mlp


# --------------------------------- main ------------------------------------ #
if __name__ == "__main__":
    key = jax.random.PRNGKey(0)
    Bsz, dim = 2, 32
    a, b = 16, 12                     # Block.forward uses spatial_size=(16, 12)
    wf = b // 2 + 1                   # -> GlobalFilter(dim, h=16, w=7)
    N = a * b                         # 192 tokens
    hidden = int(dim * 4.0)           # 128

    kx, kw, kw1, kb1, kw2, kb2 = jax.random.split(key, 6)
    x = jax.random.normal(kx, (Bsz, N, dim), dtype=jnp.float32)

    # --- deterministic parameter init (shapes from module __init__) ---
    complex_weight = 0.02 * jax.random.normal(kw, (a, wf, dim, 2),
                                              dtype=jnp.float32)
    g1 = jnp.ones((1, dim), jnp.float32)
    be1 = jnp.zeros((1, dim), jnp.float32)
    g2 = jnp.ones((1, dim), jnp.float32)
    be2 = jnp.zeros((1, dim), jnp.float32)
    s1 = 1.0 / math.sqrt(dim)
    W1 = jax.random.uniform(kw1, (dim, hidden), jnp.float32, -s1, s1)
    b1 = jax.random.uniform(kb1, (1, hidden), jnp.float32, -s1, s1)
    s2 = 1.0 / math.sqrt(hidden)
    W2 = jax.random.uniform(kw2, (hidden, dim), jnp.float32, -s2, s2)
    b2 = jax.random.uniform(kb2, (1, dim), jnp.float32, -s2, s2)

    kparams = prepare_block_params(a, b, dim, complex_weight,
                                   g1, be1, g2, be2, W1, b1, W2, b2)

    fwd = jax.jit(block_forward)
    out = jax.block_until_ready(fwd(x, kparams))
    ref = jax.block_until_ready(
        block_reference(x, a, b, g1, be1, g2, be2, complex_weight,
                        W1, b1, W2, b2))

    # bf16-input / f32-accumulate MXU numerics (per perf review): expected
    # max-abs error here is ~5e-3 (the two LayerNorm renormalisations amplify
    # the bf16 rounding of the DFT operands); structural bugs would be O(1),
    # so a 2e-2 tolerance still catches real errors with margin.
    if not jnp.allclose(out, ref, atol=2e-2, rtol=2e-2):
        max_err = float(jnp.max(jnp.abs(out - ref)))
        raise AssertionError(f"kernel/reference mismatch, max abs err={max_err}")
    print("KERNEL_OK")
</pallas_src>

<mosaic_0001>
module attributes {stable_mosaic.version = 11 : i64} {
  func.func @block_kernel(%arg0: i32, %arg1: memref<2x32x192xf32, #tpu.memory_space<vmem>>, %arg2: memref<32x1xf32, #tpu.memory_space<vmem>>, %arg3: memref<32x1xf32, #tpu.memory_space<vmem>>, %arg4: memref<32x1xf32, #tpu.memory_space<vmem>>, %arg5: memref<32x1xf32, #tpu.memory_space<vmem>>, %arg6: memref<192x256xbf16, #tpu.memory_space<vmem>>, %arg7: memref<256x192xbf16, #tpu.memory_space<vmem>>, %arg8: memref<32x128xf32, #tpu.memory_space<vmem>>, %arg9: memref<32x128xf32, #tpu.memory_space<vmem>>, %arg10: memref<128x32xbf16, #tpu.memory_space<vmem>>, %arg11: memref<128x1xf32, #tpu.memory_space<vmem>>, %arg12: memref<32x128xbf16, #tpu.memory_space<vmem>>, %arg13: memref<32x1xf32, #tpu.memory_space<vmem>>, %arg14: memref<2x32x192xf32, #tpu.memory_space<vmem>>) attributes {dimension_semantics = [#tpu.dimension_semantics<arbitrary>], iteration_bounds = array<i64: 1>, scalar_prefetch = 0 : i64, scratch_operands = 0 : i64, tpu.core_type = #tpu.core_type<tc>, window_params = [{pipeline_mode = #tpu.pipeline_mode<synchronous>, transform_indices = @transform_0, window_bounds = array<i64: 2, 32, 192>}, {pipeline_mode = #tpu.pipeline_mode<synchronous>, transform_indices = @transform_1, window_bounds = array<i64: 32, 1>}, {pipeline_mode = #tpu.pipeline_mode<synchronous>, transform_indices = @transform_2, window_bounds = array<i64: 32, 1>}, {pipeline_mode = #tpu.pipeline_mode<synchronous>, transform_indices = @transform_3, window_bounds = array<i64: 32, 1>}, {pipeline_mode = #tpu.pipeline_mode<synchronous>, transform_indices = @transform_4, window_bounds = array<i64: 32, 1>}, {pipeline_mode = #tpu.pipeline_mode<synchronous>, transform_indices = @transform_5, window_bounds = array<i64: 192, 256>}, {pipeline_mode = #tpu.pipeline_mode<synchronous>, transform_indices = @transform_6, window_bounds = array<i64: 256, 192>}, {pipeline_mode = #tpu.pipeline_mode<synchronous>, transform_indices = @transform_7, window_bounds = array<i64: 32, 128>}, {pipeline_mode = #tpu.pipeline_mode<synchronous>, transform_indices = @transform_8, window_bounds = array<i64: 32, 128>}, {pipeline_mode = #tpu.pipeline_mode<synchronous>, transform_indices = @transform_9, window_bounds = array<i64: 128, 32>}, {pipeline_mode = #tpu.pipeline_mode<synchronous>, transform_indices = @transform_10, window_bounds = array<i64: 128, 1>}, {pipeline_mode = #tpu.pipeline_mode<synchronous>, transform_indices = @transform_11, window_bounds = array<i64: 32, 128>}, {pipeline_mode = #tpu.pipeline_mode<synchronous>, transform_indices = @transform_12, window_bounds = array<i64: 32, 1>}, {pipeline_mode = #tpu.pipeline_mode<synchronous>, transform_indices = @transform_13, window_bounds = array<i64: 2, 32, 192>}]} {
    %c0 = arith.constant 0 : index
    %c0_0 = arith.constant 0 : index
    %c0_1 = arith.constant 0 : index
    %0 = vector.load %arg1[%c0, %c0_0, %c0_1] : memref<2x32x192xf32, #tpu.memory_space<vmem>>, vector<2x32x192xf32>
    %c0_2 = arith.constant 0 : index
    %c0_3 = arith.constant 0 : index
    %1 = vector.load %arg2[%c0_2, %c0_3] : memref<32x1xf32, #tpu.memory_space<vmem>>, vector<32x1xf32>
    %c0_4 = arith.constant 0 : index
    %c0_5 = arith.constant 0 : index
    %2 = vector.load %arg3[%c0_4, %c0_5] : memref<32x1xf32, #tpu.memory_space<vmem>>, vector<32x1xf32>
    %cst = arith.constant dense<0.000000e+00> : vector<2x192xf32>
    %3 = vector.multi_reduction <add>, %0, %cst [1] : vector<2x32x192xf32> to vector<2x192xf32>
    %4 = vector.shape_cast %3 : vector<2x192xf32> to vector<2x1x192xf32>
    %cst_6 = arith.constant 3.200000e+01 : f32
    %5 = vector.broadcast %cst_6 : f32 to vector<2x1x192xf32>
    %6 = arith.divf %4, %5 : vector<2x1x192xf32>
    %7 = arith.mulf %0, %0 : vector<2x32x192xf32>
    %cst_7 = arith.constant dense<0.000000e+00> : vector<2x192xf32>
    %8 = vector.multi_reduction <add>, %7, %cst_7 [1] : vector<2x32x192xf32> to vector<2x192xf32>
    %9 = vector.shape_cast %8 : vector<2x192xf32> to vector<2x1x192xf32>
    %cst_8 = arith.constant 3.200000e+01 : f32
    %10 = vector.broadcast %cst_8 : f32 to vector<2x1x192xf32>
    %11 = arith.divf %9, %10 : vector<2x1x192xf32>
    %12 = arith.mulf %6, %6 : vector<2x1x192xf32>
    %13 = arith.subf %11, %12 : vector<2x1x192xf32>
    %14 = vector.broadcast %6 : vector<2x1x192xf32> to vector<2x32x192xf32>
    %15 = arith.subf %0, %14 : vector<2x32x192xf32>
    %cst_9 = arith.constant 9.99999974E-6 : f32
    %16 = vector.broadcast %cst_9 : f32 to vector<2x1x192xf32>
    %17 = arith.addf %13, %16 : vector<2x1x192xf32>
    %18 = math.rsqrt %17 : vector<2x1x192xf32>
    %19 = vector.broadcast %18 : vector<2x1x192xf32> to vector<2x32x192xf32>
    %20 = arith.mulf %15, %19 : vector<2x32x192xf32>
    %21 = vector.shape_cast %1 : vector<32x1xf32> to vector<1x32x1xf32>
    %22 = vector.broadcast %21 : vector<1x32x1xf32> to vector<2x32x192xf32>
    %23 = arith.mulf %20, %22 : vector<2x32x192xf32>
    %24 = vector.shape_cast %2 : vector<32x1xf32> to vector<1x32x1xf32>
    %25 = vector.broadcast %24 : vector<1x32x1xf32> to vector<2x32x192xf32>
    %26 = arith.addf %23, %25 : vector<2x32x192xf32>
    %27 = vector.shape_cast %26 : vector<2x32x192xf32> to vector<64x192xf32>
    %28 = arith.truncf %27 : vector<64x192xf32> to vector<64x192xbf16>
    %c0_10 = arith.constant 0 : index
    %c0_11 = arith.constant 0 : index
    %29 = vector.load %arg6[%c0_10, %c0_11] : memref<192x256xbf16, #tpu.memory_space<vmem>>, vector<192x256xbf16>
    %cst_12 = arith.constant dense<0.000000e+00> : vector<64x256xf32>
    %30 = tpu.matmul %28, %29, %cst_12 {dimension_numbers = #tpu.dot_dimension_numbers<[1], [0], [0], [1], [0, 0, 1, 1], [], []>} : vector<64x192xbf16>, vector<192x256xbf16>, vector<64x256xf32> -> vector<64x256xf32>
    %31 = vector.shape_cast %30 : vector<64x256xf32> to vector<2x32x256xf32>
    %32 = vector.extract_strided_slice %31 {offsets = [0, 0, 0], sizes = [2, 32, 128], strides = [1, 1, 1]} : vector<2x32x256xf32> to vector<2x32x128xf32>
    %33 = vector.extract_strided_slice %31 {offsets = [0, 0, 128], sizes = [2, 32, 128], strides = [1, 1, 1]} : vector<2x32x256xf32> to vector<2x32x128xf32>
    %c0_13 = arith.constant 0 : index
    %c0_14 = arith.constant 0 : index
    %34 = vector.load %arg8[%c0_13, %c0_14] : memref<32x128xf32, #tpu.memory_space<vmem>>, vector<32x128xf32>
    %35 = vector.shape_cast %34 : vector<32x128xf32> to vector<1x32x128xf32>
    %c0_15 = arith.constant 0 : index
    %c0_16 = arith.constant 0 : index
    %36 = vector.load %arg9[%c0_15, %c0_16] : memref<32x128xf32, #tpu.memory_space<vmem>>, vector<32x128xf32>
    %37 = vector.shape_cast %36 : vector<32x128xf32> to vector<1x32x128xf32>
    %38 = vector.broadcast %35 : vector<1x32x128xf32> to vector<2x32x128xf32>
    %39 = arith.mulf %32, %38 : vector<2x32x128xf32>
    %40 = vector.broadcast %37 : vector<1x32x128xf32> to vector<2x32x128xf32>
    %41 = arith.mulf %33, %40 : vector<2x32x128xf32>
    %42 = arith.subf %39, %41 : vector<2x32x128xf32>
    %43 = vector.broadcast %37 : vector<1x32x128xf32> to vector<2x32x128xf32>
    %44 = arith.mulf %32, %43 : vector<2x32x128xf32>
    %45 = vector.broadcast %35 : vector<1x32x128xf32> to vector<2x32x128xf32>
    %46 = arith.mulf %33, %45 : vector<2x32x128xf32>
    %47 = arith.addf %44, %46 : vector<2x32x128xf32>
    %48 = tpu.concatenate %42, %47 in 2 : vector<2x32x128xf32>, vector<2x32x128xf32> -> vector<2x32x256xf32>
    %49 = vector.shape_cast %48 : vector<2x32x256xf32> to vector<64x256xf32>
    %50 = arith.truncf %49 : vector<64x256xf32> to vector<64x256xbf16>
    %c0_17 = arith.constant 0 : index
    %c0_18 = arith.constant 0 : index
    %51 = vector.load %arg7[%c0_17, %c0_18] : memref<256x192xbf16, #tpu.memory_space<vmem>>, vector<256x192xbf16>
    %cst_19 = arith.constant dense<0.000000e+00> : vector<64x192xf32>
    %52 = tpu.matmul %50, %51, %cst_19 {dimension_numbers = #tpu.dot_dimension_numbers<[1], [0], [0], [1], [0, 0, 1, 1], [], []>} : vector<64x256xbf16>, vector<256x192xbf16>, vector<64x192xf32> -> vector<64x192xf32>
    %53 = vector.shape_cast %52 : vector<64x192xf32> to vector<2x32x192xf32>
    %c0_20 = arith.constant 0 : index
    %c0_21 = arith.constant 0 : index
    %54 = vector.load %arg4[%c0_20, %c0_21] : memref<32x1xf32, #tpu.memory_space<vmem>>, vector<32x1xf32>
    %c0_22 = arith.constant 0 : index
    %c0_23 = arith.constant 0 : index
    %55 = vector.load %arg5[%c0_22, %c0_23] : memref<32x1xf32, #tpu.memory_space<vmem>>, vector<32x1xf32>
    %cst_24 = arith.constant dense<0.000000e+00> : vector<2x192xf32>
    %56 = vector.multi_reduction <add>, %53, %cst_24 [1] : vector<2x32x192xf32> to vector<2x192xf32>
    %57 = vector.shape_cast %56 : vector<2x192xf32> to vector<2x1x192xf32>
    %cst_25 = arith.constant 3.200000e+01 : f32
    %58 = vector.broadcast %cst_25 : f32 to vector<2x1x192xf32>
    %59 = arith.divf %57, %58 : vector<2x1x192xf32>
    %60 = arith.mulf %53, %53 : vector<2x32x192xf32>
    %cst_26 = arith.constant dense<0.000000e+00> : vector<2x192xf32>
    %61 = vector.multi_reduction <add>, %60, %cst_26 [1] : vector<2x32x192xf32> to vector<2x192xf32>
    %62 = vector.shape_cast %61 : vector<2x192xf32> to vector<2x1x192xf32>
    %cst_27 = arith.constant 3.200000e+01 : f32
    %63 = vector.broadcast %cst_27 : f32 to vector<2x1x192xf32>
    %64 = arith.divf %62, %63 : vector<2x1x192xf32>
    %65 = arith.mulf %59, %59 : vector<2x1x192xf32>
    %66 = arith.subf %64, %65 : vector<2x1x192xf32>
    %67 = vector.broadcast %59 : vector<2x1x192xf32> to vector<2x32x192xf32>
    %68 = arith.subf %53, %67 : vector<2x32x192xf32>
    %cst_28 = arith.constant 9.99999974E-6 : f32
    %69 = vector.broadcast %cst_28 : f32 to vector<2x1x192xf32>
    %70 = arith.addf %66, %69 : vector<2x1x192xf32>
    %71 = math.rsqrt %70 : vector<2x1x192xf32>
    %72 = vector.broadcast %71 : vector<2x1x192xf32> to vector<2x32x192xf32>
    %73 = arith.mulf %68, %72 : vector<2x32x192xf32>
    %74 = vector.shape_cast %54 : vector<32x1xf32> to vector<1x32x1xf32>
    %75 = vector.broadcast %74 : vector<1x32x1xf32> to vector<2x32x192xf32>
    %76 = arith.mulf %73, %75 : vector<2x32x192xf32>
    %77 = vector.shape_cast %55 : vector<32x1xf32> to vector<1x32x1xf32>
    %78 = vector.broadcast %77 : vector<1x32x1xf32> to vector<2x32x192xf32>
    %79 = arith.addf %76, %78 : vector<2x32x192xf32>
    %80 = arith.truncf %79 : vector<2x32x192xf32> to vector<2x32x192xbf16>
    %c0_29 = arith.constant 0 : index
    %c0_30 = arith.constant 0 : index
    %81 = vector.load %arg10[%c0_29, %c0_30] : memref<128x32xbf16, #tpu.memory_space<vmem>>, vector<128x32xbf16>
    %c0_31 = arith.constant 0 : index
    %c0_32 = arith.constant 0 : index
    %82 = vector.load %arg12[%c0_31, %c0_32] : memref<32x128xbf16, #tpu.memory_space<vmem>>, vector<32x128xbf16>
    %c0_33 = arith.constant 0 : index
    %c0_34 = arith.constant 0 : index
    %83 = vector.load %arg11[%c0_33, %c0_34] : memref<128x1xf32, #tpu.memory_space<vmem>>, vector<128x1xf32>
    %c0_35 = arith.constant 0 : index
    %c0_36 = arith.constant 0 : index
    %84 = vector.load %arg13[%c0_35, %c0_36] : memref<32x1xf32, #tpu.memory_space<vmem>>, vector<32x1xf32>
    %85 = vector.extract_strided_slice %80 {offsets = [0, 0, 0], sizes = [1, 32, 192], strides = [1, 1, 1]} : vector<2x32x192xbf16> to vector<1x32x192xbf16>
    %86 = vector.shape_cast %85 : vector<1x32x192xbf16> to vector<32x192xbf16>
    %cst_37 = arith.constant dense<0.000000e+00> : vector<128x192xf32>
    %87 = tpu.matmul %81, %86, %cst_37 {dimension_numbers = #tpu.dot_dimension_numbers<[1], [0], [0], [1], [0, 0, 1, 1], [], []>} : vector<128x32xbf16>, vector<32x192xbf16>, vector<128x192xf32> -> vector<128x192xf32>
    %88 = vector.broadcast %83 : vector<128x1xf32> to vector<128x192xf32>
    %89 = arith.addf %87, %88 : vector<128x192xf32>
    %cst_38 = arith.constant 5.000000e-01 : f32
    %90 = vector.broadcast %cst_38 : f32 to vector<128x192xf32>
    %91 = arith.mulf %90, %89 : vector<128x192xf32>
    %cst_39 = arith.constant 0.707106769 : f32
    %92 = vector.broadcast %cst_39 : f32 to vector<128x192xf32>
    %93 = arith.mulf %89, %92 : vector<128x192xf32>
    %94 = math.erf %93 : vector<128x192xf32>
    %cst_40 = arith.constant 1.000000e+00 : f32
    %95 = vector.broadcast %cst_40 : f32 to vector<128x192xf32>
    %96 = arith.addf %95, %94 : vector<128x192xf32>
    %97 = arith.mulf %91, %96 : vector<128x192xf32>
    %98 = arith.truncf %97 : vector<128x192xf32> to vector<128x192xbf16>
    %cst_41 = arith.constant dense<0.000000e+00> : vector<32x192xf32>
    %99 = tpu.matmul %82, %98, %cst_41 {dimension_numbers = #tpu.dot_dimension_numbers<[1], [0], [0], [1], [0, 0, 1, 1], [], []>} : vector<32x128xbf16>, vector<128x192xbf16>, vector<32x192xf32> -> vector<32x192xf32>
    %100 = vector.broadcast %84 : vector<32x1xf32> to vector<32x192xf32>
    %101 = arith.addf %99, %100 : vector<32x192xf32>
    %102 = vector.extract_strided_slice %0 {offsets = [0, 0, 0], sizes = [1, 32, 192], strides = [1, 1, 1]} : vector<2x32x192xf32> to vector<1x32x192xf32>
    %103 = vector.shape_cast %102 : vector<1x32x192xf32> to vector<32x192xf32>
    %104 = arith.addf %103, %101 : vector<32x192xf32>
    %c0_42 = arith.constant 0 : index
    %c0_43 = arith.constant 0 : index
    %c0_44 = arith.constant 0 : index
    %105 = vector.load %arg14[%c0_42, %c0_43, %c0_44] : memref<2x32x192xf32, #tpu.memory_space<vmem>>, vector<1x32x192xf32>
    %106 = vector.shape_cast %105 : vector<1x32x192xf32> to vector<32x192xf32>
    %107 = vector.shape_cast %104 : vector<32x192xf32> to vector<1x32x192xf32>
    tpu.vector_store %arg14[%c0_42, %c0_43, %c0_44], %107 {strides = array<i32>} : memref<2x32x192xf32, #tpu.memory_space<vmem>>, vector<1x32x192xf32>,
    %108 = vector.extract_strided_slice %80 {offsets = [1, 0, 0], sizes = [1, 32, 192], strides = [1, 1, 1]} : vector<2x32x192xbf16> to vector<1x32x192xbf16>
    %109 = vector.shape_cast %108 : vector<1x32x192xbf16> to vector<32x192xbf16>
    %cst_45 = arith.constant dense<0.000000e+00> : vector<128x192xf32>
    %110 = tpu.matmul %81, %109, %cst_45 {dimension_numbers = #tpu.dot_dimension_numbers<[1], [0], [0], [1], [0, 0, 1, 1], [], []>} : vector<128x32xbf16>, vector<32x192xbf16>, vector<128x192xf32> -> vector<128x192xf32>
    %111 = vector.broadcast %83 : vector<128x1xf32> to vector<128x192xf32>
    %112 = arith.addf %110, %111 : vector<128x192xf32>
    %cst_46 = arith.constant 5.000000e-01 : f32
    %113 = vector.broadcast %cst_46 : f32 to vector<128x192xf32>
    %114 = arith.mulf %113, %112 : vector<128x192xf32>
    %cst_47 = arith.constant 0.707106769 : f32
    %115 = vector.broadcast %cst_47 : f32 to vector<128x192xf32>
    %116 = arith.mulf %112, %115 : vector<128x192xf32>
    %117 = math.erf %116 : vector<128x192xf32>
    %cst_48 = arith.constant 1.000000e+00 : f32
    %118 = vector.broadcast %cst_48 : f32 to vector<128x192xf32>
    %119 = arith.addf %118, %117 : vector<128x192xf32>
    %120 = arith.mulf %114, %119 : vector<128x192xf32>
    %121 = arith.truncf %120 : vector<128x192xf32> to vector<128x192xbf16>
    %cst_49 = arith.constant dense<0.000000e+00> : vector<32x192xf32>
    %122 = tpu.matmul %82, %121, %cst_49 {dimension_numbers = #tpu.dot_dimension_numbers<[1], [0], [0], [1], [0, 0, 1, 1], [], []>} : vector<32x128xbf16>, vector<128x192xbf16>, vector<32x192xf32> -> vector<32x192xf32>
    %123 = vector.broadcast %84 : vector<32x1xf32> to vector<32x192xf32>
    %124 = arith.addf %122, %123 : vector<32x192xf32>
    %125 = vector.extract_strided_slice %0 {offsets = [1, 0, 0], sizes = [1, 32, 192], strides = [1, 1, 1]} : vector<2x32x192xf32> to vector<1x32x192xf32>
    %126 = vector.shape_cast %125 : vector<1x32x192xf32> to vector<32x192xf32>
    %127 = arith.addf %126, %124 : vector<32x192xf32>
    %c1 = arith.constant 1 : index
    %c0_50 = arith.constant 0 : index
    %c0_51 = arith.constant 0 : index
    %128 = vector.load %arg14[%c1, %c0_50, %c0_51] : memref<2x32x192xf32, #tpu.memory_space<vmem>>, vector<1x32x192xf32>
    %129 = vector.shape_cast %128 : vector<1x32x192xf32> to vector<32x192xf32>
    %130 = vector.shape_cast %127 : vector<32x192xf32> to vector<1x32x192xf32>
    tpu.vector_store %arg14[%c1, %c0_50, %c0_51], %130 {strides = array<i32>} : memref<2x32x192xf32, #tpu.memory_space<vmem>>, vector<1x32x192xf32>,
    return
  }
  func.func @transform_0(%arg0: i32) -> (i32, i32, i32) {
    %c0_i32 = arith.constant 0 : i32
    %c0_i32_0 = arith.constant 0 : i32
    %c0_i32_1 = arith.constant 0 : i32
    %c0_i32_2 = arith.constant 0 : i32
    return %c0_i32, %c0_i32_0, %c0_i32_1 : i32, i32, i32
  }
  func.func @transform_1(%arg0: i32) -> (i32, i32) {
    %c0_i32 = arith.constant 0 : i32
    %c0_i32_0 = arith.constant 0 : i32
    %c0_i32_1 = arith.constant 0 : i32
    return %c0_i32, %c0_i32_0 : i32, i32
  }
  func.func @transform_2(%arg0: i32) -> (i32, i32) {
    %c0_i32 = arith.constant 0 : i32
    %c0_i32_0 = arith.constant 0 : i32
    %c0_i32_1 = arith.constant 0 : i32
    return %c0_i32, %c0_i32_0 : i32, i32
  }
  func.func @transform_3(%arg0: i32) -> (i32, i32) {
    %c0_i32 = arith.constant 0 : i32
    %c0_i32_0 = arith.constant 0 : i32
    %c0_i32_1 = arith.constant 0 : i32
    return %c0_i32, %c0_i32_0 : i32, i32
  }
  func.func @transform_4(%arg0: i32) -> (i32, i32) {
    %c0_i32 = arith.constant 0 : i32
    %c0_i32_0 = arith.constant 0 : i32
    %c0_i32_1 = arith.constant 0 : i32
    return %c0_i32, %c0_i32_0 : i32, i32
  }
  func.func @transform_5(%arg0: i32) -> (i32, i32) {
    %c0_i32 = arith.constant 0 : i32
    %c0_i32_0 = arith.constant 0 : i32
    %c0_i32_1 = arith.constant 0 : i32
    return %c0_i32, %c0_i32_0 : i32, i32
  }
  func.func @transform_6(%arg0: i32) -> (i32, i32) {
    %c0_i32 = arith.constant 0 : i32
    %c0_i32_0 = arith.constant 0 : i32
    %c0_i32_1 = arith.constant 0 : i32
    return %c0_i32, %c0_i32_0 : i32, i32
  }
  func.func @transform_7(%arg0: i32) -> (i32, i32) {
    %c0_i32 = arith.constant 0 : i32
    %c0_i32_0 = arith.constant 0 : i32
    %c0_i32_1 = arith.constant 0 : i32
    return %c0_i32, %c0_i32_0 : i32, i32
  }
  func.func @transform_8(%arg0: i32) -> (i32, i32) {
    %c0_i32 = arith.constant 0 : i32
    %c0_i32_0 = arith.constant 0 : i32
    %c0_i32_1 = arith.constant 0 : i32
    return %c0_i32, %c0_i32_0 : i32, i32
  }
  func.func @transform_9(%arg0: i32) -> (i32, i32) {
    %c0_i32 = arith.constant 0 : i32
    %c0_i32_0 = arith.constant 0 : i32
    %c0_i32_1 = arith.constant 0 : i32
    return %c0_i32, %c0_i32_0 : i32, i32
  }
  func.func @transform_10(%arg0: i32) -> (i32, i32) {
    %c0_i32 = arith.constant 0 : i32
    %c0_i32_0 = arith.constant 0 : i32
    %c0_i32_1 = arith.constant 0 : i32
    return %c0_i32, %c0_i32_0 : i32, i32
  }
  func.func @transform_11(%arg0: i32) -> (i32, i32) {
    %c0_i32 = arith.constant 0 : i32
    %c0_i32_0 = arith.constant 0 : i32
    %c0_i32_1 = arith.constant 0 : i32
    return %c0_i32, %c0_i32_0 : i32, i32
  }
  func.func @transform_12(%arg0: i32) -> (i32, i32) {
    %c0_i32 = arith.constant 0 : i32
    %c0_i32_0 = arith.constant 0 : i32
    %c0_i32_1 = arith.constant 0 : i32
    return %c0_i32, %c0_i32_0 : i32, i32
  }
  func.func @transform_13(%arg0: i32) -> (i32, i32, i32) {
    %c0_i32 = arith.constant 0 : i32
    %c0_i32_0 = arith.constant 0 : i32
    %c0_i32_1 = arith.constant 0 : i32
    %c0_i32_2 = arith.constant 0 : i32
    return %c0_i32, %c0_i32_0, %c0_i32_1 : i32, i32, i32
  }
}

</mosaic_0001>

<bundles_post_ra>
// kernel: block_forward.1
= control target key start
LH: loop header
LB: loop body
LE: loop exit
PB: predicated region body
PF: predicated region fallthrough
CT: control target
= control target key end

     0   :  { %v3693_v2 = vmov 0   ;;  %s3679_s0 = inlined_call_operand.vmem [shape: f32[2,32,192], index: 0, kind: input, shape index: {}]   ;;  %s3680_s1 = inlined_call_operand.vmem [shape: f32[32,1], index: 1, kind: input, shape index: {}]   ;;  %s3681_s2 = inlined_call_operand.vmem [shape: f32[32,1], index: 2, kind: input, shape index: {}]   ;;  %s3682_s3 = inlined_call_operand.vmem [shape: f32[32,1], index: 3, kind: input, shape index: {}]   ;;  %s3683_s4 = inlined_call_operand.vmem [shape: f32[32,1], index: 4, kind: input, shape index: {}]   ;;  %s3684_s5 = inlined_call_operand.vmem [shape: bf16[192,256], index: 5, kind: input, shape index: {}]   ;;  %s3685_s6 = inlined_call_operand.vmem [shape: bf16[256,192], index: 6, kind: input, shape index: {}]   ;;  %s3686_s7 = inlined_call_operand.vmem [shape: f32[32,128], index: 7, kind: input, shape index: {}]   ;;  %s3687_s8 = inlined_call_operand.vmem [shape: f32[32,128], index: 8, kind: input, shape index: {}]   ;;  %s3688_s9 = inlined_call_operand.vmem [shape: bf16[128,32], index: 9, kind: input, shape index: {}]   ;;  %s3689_s10 = inlined_call_operand.vmem [shape: f32[128,1], index: 10, kind: input, shape index: {}]   ;;  %s3690_s11 = inlined_call_operand.vmem [shape: bf16[32,128], index: 11, kind: input, shape index: {}]   ;;  %s3691_s12 = inlined_call_operand.vmem [shape: f32[32,1], index: 12, kind: input, shape index: {}]   ;;  %s3692_s13 = inlined_call_operand.hbm [shape: f32[2,32,192], index: 13, kind: output, shape index: {}]  }
   0x1   :  { %v66_v0 = vld [vmem:[%s3681_s2] sm:$0xff]  ;;  %2159 = vset.pattern.permute.xlu1 %v3693_v2  ;;  %2158 = vset.pattern.permute.xlu0 %v3693_v2  ;;  %v67_v3 = vld [vmem:[%s3681_s2 + $0x8] sm:$0xff]  ;;  %v65_v5 = vld [vmem:[%s3680_s1 + $0x18] sm:$0xff] }
   0x2   :  { %v62_v1 = vld [vmem:[%s3680_s1] sm:$0xff]  ;;  %270 = vperm.xlu1 %2159, %v66_v0   ;;  %v63_v4 = vld [vmem:[%s3680_s1 + $0x8] sm:$0xff]  ;;  %v64_v6 = vld [vmem:[%s3680_s1 + $0x10] sm:$0xff] }
   0x3   :  { %234 = vperm.xlu0 %2158, %v62_v1   ;;  %v69_v7 = vld [vmem:[%s3681_s2 + $0x18] sm:$0xff]  ;;  %v68_v8 = vld [vmem:[%s3681_s2 + $0x10] sm:$0xff]  ;;  %v2160_v9 = vld [vmem:[%s3684_s5 + $0x4] ss:$8 sps:$4 sm:$0xff]  }
   0x4   :  { %v2162_v10 = vld [vmem:[%s3684_s5] ss:$8 sps:$4 sm:$0xff]   ;;  %v2163_v11 = vld [vmem:[%s3684_s5 + $0x14] ss:$8 sps:$4 sm:$0xff]   ;;  %468 = vmatprep.subr.bf16.mxu0 %v2160_v9  ;;  %v2165_v14 = vld [vmem:[%s3684_s5 + $0x10] ss:$8 sps:$4 sm:$0xff]  }
   0x5   :  { %v871_v12 = vld [vmem:[%s3682_s3 + $0x8] sm:$0xff]  ;;  %v870_v13 = vld [vmem:[%s3682_s3] sm:$0xff]  ;;  %469 = vmatpush1.bf16.msra.mxu0 %v2162_v10  ;;  %v2169_v19 = vld [vmem:[%s3684_s5 + $0x34] ss:$8 sps:$4 sm:$0xff]  }
   0x6   :  { %275 = vperm.xlu1 %2159, %v67_v3   ;;  %470 = vmatprep.subr.bf16.mxu0 %v2163_v11  ;;  %v2166_v15 = vld [vmem:[%s3684_s5 + $0x24] ss:$8 sps:$4 sm:$0xff]   ;;  %v2168_v18 = vld [vmem:[%s3684_s5 + $0x20] ss:$8 sps:$4 sm:$0xff]   ;;  %v873_v20 = vld [vmem:[%s3682_s3 + $0x18] sm:$0xff] }
   0x7   :  { %239 = vperm.xlu0 %2158, %v63_v4   ;;  %v875_v16 = vld [vmem:[%s3683_s4 + $0x8] sm:$0xff]  ;;  %v874_v17 = vld [vmem:[%s3683_s4] sm:$0xff]  ;;  %v872_v21 = vld [vmem:[%s3682_s3 + $0x10] sm:$0xff] }
   0x8   :  { %v2171_v22 = vld [vmem:[%s3684_s5 + $0x30] ss:$8 sps:$4 sm:$0xff]   ;;  %v2172_v23 = vld [vmem:[%s3684_s5 + $0x44] ss:$8 sps:$4 sm:$0xff]   ;;  %v2174_v26 = vld [vmem:[%s3684_s5 + $0x40] ss:$8 sps:$4 sm:$0xff]  }
   0x9   :  { %471 = vmatpush1.bf16.msra.mxu0 %v2165_v14  ;;  %v877_v24 = vld [vmem:[%s3683_s4 + $0x18] sm:$0xff]  ;;  %v876_v25 = vld [vmem:[%s3683_s4 + $0x10] sm:$0xff]  ;;  %v1139_v28 = vld [vmem:[%s3689_s10 + $0x8] sm:$0xff] }
   0xa   :  { %249 = vperm.xlu1 %2159, %v65_v5   ;;  %472 = vmatprep.subr.bf16.mxu0 %v2166_v15  ;;  %v2175_v27 = vld [vmem:[%s3684_s5 + $0x54] ss:$8 sps:$4 sm:$0xff]   ;;  %v1138_v29 = vld [vmem:[%s3689_s10] sm:$0xff]  ;;  %v2177_v30 = vld [vmem:[%s3684_s5 + $0x50] ss:$8 sps:$4 sm:$0xff]  }
   0xb   :  { %244 = vperm.xlu0 %2158, %v64_v6   ;;  %v1141_v31 = vld [vmem:[%s3689_s10 + $0x18] sm:$0xff]  ;;  %v1140_v32 = vld [vmem:[%s3689_s10 + $0x10] sm:$0xff]  ;;  %v2178_v33 = vld [vmem:[%s3684_s5 + $0x64] ss:$8 sps:$4 sm:$0xff]  }
   0xc   :  { %v2180_v34 = vld [vmem:[%s3684_s5 + $0x60] ss:$8 sps:$4 sm:$0xff]   ;;  %v2181_v35 = vld [vmem:[%s3684_s5 + $0x74] ss:$8 sps:$4 sm:$0xff]   ;;  %v2183_v38 = vld [vmem:[%s3684_s5 + $0x70] ss:$8 sps:$4 sm:$0xff]  }
   0xd   :  { %473 = vmatpush1.bf16.msra.mxu0 %v2168_v18  ;;  %v1143_v36 = vld [vmem:[%s3689_s10 + $0x28] sm:$0xff]  ;;  %v1142_v37 = vld [vmem:[%s3689_s10 + $0x20] sm:$0xff]  ;;  %v1145_v40 = vld [vmem:[%s3689_s10 + $0x38] sm:$0xff] }
   0xe   :  { %285 = vperm.xlu1 %2159, %v69_v7   ;;  %474 = vmatprep.subr.bf16.mxu0 %v2169_v19  ;;  %v2184_v39 = vld [vmem:[%s3684_s5 + $0x84] ss:$8 sps:$4 sm:$0xff]   ;;  %v1144_v41 = vld [vmem:[%s3689_s10 + $0x30] sm:$0xff]  ;;  %v2186_v42 = vld [vmem:[%s3684_s5 + $0x80] ss:$8 sps:$4 sm:$0xff]  }
   0xf   :  { %280 = vperm.xlu0 %2158, %v68_v8   ;;  %v1147_v43 = vld [vmem:[%s3689_s10 + $0x48] sm:$0xff]  ;;  %v2187_v44 = vld [vmem:[%s3684_s5 + $0x94] ss:$8 sps:$4 sm:$0xff]   ;;  %v1146_v45 = vld [vmem:[%s3689_s10 + $0x40] sm:$0xff] }
  0x10   :  { %v2189_v46 = vld [vmem:[%s3684_s5 + $0x90] ss:$8 sps:$4 sm:$0xff]   ;;  %v2190_v47 = vld [vmem:[%s3684_s5 + $0xa4] ss:$8 sps:$4 sm:$0xff]   ;;  %v2192_v50 = vld [vmem:[%s3684_s5 + $0xa0] ss:$8 sps:$4 sm:$0xff]  }
  0x11   :  { %475 = vmatpush1.bf16.msra.mxu0 %v2171_v22  ;;  %v1149_v48 = vld [vmem:[%s3689_s10 + $0x58] sm:$0xff]  ;;  %v1148_v49 = vld [vmem:[%s3689_s10 + $0x50] sm:$0xff] }
  0x12   :  { %1045 = vperm.xlu1 %2159, %v871_v12   ;;  %476 = vmatprep.subr.bf16.mxu0 %v2172_v23  ;;  %v2193_v51 = vld [vmem:[%s3684_s5 + $0xb4] ss:$8 sps:$4 sm:$0xff]  }
  0x13   :  { %1040 = vperm.xlu0 %2158, %v870_v13  }
  0x15   :  { %477 = vmatpush1.bf16.msra.mxu0 %v2174_v26 }
  0x16   :  { %1081 = vperm.xlu1 %2159, %v875_v16   ;;  %478 = vmatprep.subr.bf16.mxu0 %v2175_v27 }
  0x17   :  { %1076 = vperm.xlu0 %2158, %v874_v17  }
  0x19   :  { %479 = vmatpush1.bf16.msra.mxu0 %v2177_v30 }
  0x1a   :  { %1055 = vperm.xlu1 %2159, %v873_v20   ;;  %480 = vmatprep.subr.bf16.mxu0 %v2178_v33 }
  0x1b   :  { %1050 = vperm.xlu0 %2158, %v872_v21  }
  0x1d   :  { %481 = vmatpush1.bf16.msra.mxu0 %v2180_v34 }
  0x1e   :  { %1091 = vperm.xlu1 %2159, %v877_v24   ;;  %482 = vmatprep.subr.bf16.mxu0 %v2181_v35 }
  0x1f   :  { %1086 = vperm.xlu0 %2158, %v876_v25  }
  0x21   :  { %483 = vmatpush1.bf16.msra.mxu0 %v2183_v38 }
  0x22   :  { %1165 = vperm.xlu1 %2159, %v1139_v28   ;;  %484 = vmatprep.subr.bf16.mxu0 %v2184_v39 }
  0x23   :  { %1160 = vperm.xlu0 %2158, %v1138_v29  }
  0x25   :  { %485 = vmatpush1.bf16.msra.mxu0 %v2186_v42 }
  0x26   :  { %1175 = vperm.xlu1 %2159, %v1141_v31   ;;  %486 = vmatprep.subr.bf16.mxu0 %v2187_v44 }
  0x27   :  { %1170 = vperm.xlu0 %2158, %v1140_v32  }
  0x29   :  { %487 = vmatpush1.bf16.msra.mxu0 %v2189_v46 }
  0x2a   :  { %1185 = vperm.xlu1 %2159, %v1143_v36   ;;  %488 = vmatprep.subr.bf16.mxu0 %v2190_v47 }
  0x2b   :  { %1180 = vperm.xlu0 %2158, %v1142_v37  }
  0x2e   :  { %1195 = vperm.xlu1 %2159, %v1145_v40  }
  0x2f   :  { %1190 = vperm.xlu0 %2158, %v1144_v41  }
  0x32   :  { %1205 = vperm.xlu1 %2159, %v1147_v43  }
  0x33   :  { %1200 = vperm.xlu0 %2158, %v1146_v45  }
  0x36   :  { %1215 = vperm.xlu1 %2159, %v1149_v48  }
  0x37   :  { %1210 = vperm.xlu0 %2158, %v1148_v49  }
  0x38   :  { %18 = vsyncpa [#allocation3], 0  ;;  %v1151_v52 = vld [vmem:[%s3689_s10 + $0x68] sm:$0xff]  ;;  %v1150_v53 = vld [vmem:[%s3689_s10 + $0x60] sm:$0xff]  ;;  %489 = vmatpush1.bf16.msra.mxu0 %v2192_v50  ;;  %vm79_vm0 = vcmask 523264   ;;  %vm1278_vm1 = vcmask 261120  }
  0x39   :  { %v2195_v54 = vld [vmem:[%s3684_s5 + $0xb0] ss:$8 sps:$4 sm:$0xff]   ;;  %490 = vmatprep.subr.bf16.mxu0 %v2193_v51  ;;  %v2685_v57 = vld [vmem:[%s3679_s0 + $0x8] sm:$0xff]  ;;  %v2695_v59 = vld [vmem:[%s3679_s0] sm:$0xff]  ;;  %s2439_s1 = smov [#allocation2]  }
  0x3a   :  { %1225 = vperm.xlu1 %2159, %v1151_v52   ;;  %v1153_v55 = vld [vmem:[%s3689_s10 + $0x78] sm:$0xff]  ;;  %v1152_v56 = vld [vmem:[%s3689_s10 + $0x70] sm:$0xff]  ;;  %v80_v61 = vsel %vm79_vm0, %v2685_v57, 0.0  ;;  %v121_v63 = vmul.f32 %v2685_v57, %v2685_v57  ;;  %v1155_v1 = vld [vmem:[%s3691_s12 + $0x8] sm:$0xff]  ;;  %v120_v6 = vmul.f32 %v2695_v59, %v2695_v59  ;;  %s2057_s28 = sshll.u32 %s2439_s1, 4  ;;  %s2058_s28 = int_to_ptr.vmem [resolvable:$true] %s2057_s28 }
  0x3b   :  { %1220 = vperm.xlu0 %2158, %v1150_v53   ;;  %v2690_v58 = vld [vmem:[%s3679_s0 + $0x18] sm:$0xff]  ;;  %v2700_v60 = vld [vmem:[%s3679_s0 + $0x10] sm:$0xff]  ;;  %v1154_v3 = vld [vmem:[%s3691_s12] sm:$0xff]  ;;  %s2414_s15 = scalar_lea.vmem %s2058_s28, 2048  ;;  %p2419_p1 = scmp.lt.s32.totalorder %s2058_s28, %s2058_s28 }
  0x3c   :  { %491 = vmatpush1.bf16.msra.mxu0 %v2195_v54  ;;  %v81_v62 = vsel %vm79_vm0, %v2690_v58, 0.0  ;;  %v123_v0 = vmul.f32 %v2690_v58, %v2690_v58  ;;  %v2719_v4 = vld [vmem:[%s3679_s0 + $0x28] sm:$0xff]  ;;  %v70_v5 = vadd.f32 %v2700_v60, %v2695_v59  ;;  %v122_v7 = vmul.f32 %v2700_v60, %v2700_v60  ;;  %v2730_v8 = vld [vmem:[%s3679_s0 + $0x20] sm:$0xff]  ;;  %v1157_v14 = vld [vmem:[%s3691_s12 + $0x18] sm:$0xff]  ;;  %p2415_p0 = scmp.ne.s32.totalorder %s2058_s28, %s2414_s15  ;;  %p2420_p2 = scmp.lt.s32.totalorder %s2414_s15, %s2414_s15 }
  0x3d   :  { %v82_v9 = vadd.f32 %v81_v62, %v80_v61  ;;  %v83_v10 = vsel %vm79_vm0, %v2719_v4, 0.0  ;;  %v125_v11 = vmul.f32 %v2719_v4, %v2719_v4  ;;  %v145_v12 = vsel %vm79_vm0, %v121_v63, 0.0  ;;  %v1156_v15 = vld [vmem:[%s3691_s12 + $0x10] sm:$0xff]  ;;  %v2747_v16 = vld [vmem:[%s3679_s0 + $0x38] sm:$0xff]  ;;  %v2757_v18 = vld [vmem:[%s3679_s0 + $0x48] sm:$0xff] }
  0x3e   :  { %1235 = vperm.xlu1 %2159, %v1153_v55   ;;  %v146_v13 = vsel %vm79_vm0, %v123_v0, 0.0  ;;  %v2752_v17 = vld [vmem:[%s3679_s0 + $0x30] sm:$0xff]  ;;  %v2762_v19 = vld [vmem:[%s3679_s0 + $0x58] sm:$0xff]  ;;  %v71_v20 = vadd.f32 %v70_v5, %v2730_v8  ;;  %v124_v21 = vmul.f32 %v2730_v8, %v2730_v8  ;;  %v136_v22 = vadd.f32 %v122_v7, %v120_v6  ;;  %v2196_v25 = vld [vmem:[%s3685_s6 + $0x4] ss:$8 sps:$4 sm:$0xff]   ;;  %p2421_p3 = por %p2420_p2, %p2419_p1 }
  0x3f   :  { %1230 = vperm.xlu0 %2158, %v1152_v56   ;;  %v84_v23 = vadd.f32 %v83_v10, %v82_v9  ;;  %v147_v24 = vadd.f32 %v146_v13, %v145_v12  ;;  %v2198_v26 = vld [vmem:[%s3685_s6] ss:$8 sps:$4 sm:$0xff]   ;;  %v2199_v27 = vld [vmem:[%s3685_s6 + $0x14] ss:$8 sps:$4 sm:$0xff]   ;;  %v85_v28 = vsel %vm79_vm0, %v2747_v16, 0.0  ;;  %v127_v29 = vmul.f32 %v2747_v16, %v2747_v16  ;;  %797 = vmatprep.subr.bf16.mxu1 %v2196_v25 }
  0x40   :  { %v148_v30 = vsel %vm79_vm0, %v125_v11, 0.0  ;;  %v102_v31 = vsel %vm79_vm0, %v2757_v18, 0.0  ;;  %v126_v32 = vmul.f32 %v2752_v17, %v2752_v17  ;;  %v129_v33 = vmul.f32 %v2757_v18, %v2757_v18  ;;  %v2790_v34 = vld [vmem:[%s3679_s0 + $0x68] sm:$0xff]  ;;  %798 = vmatpush1.bf16.msra.mxu1 %v2198_v26  ;;  %v2201_v39 = vld [vmem:[%s3685_s6 + $0x10] ss:$8 sps:$4 sm:$0xff]   ;;  %v2807_v44 = vld [vmem:[%s3679_s0 + $0x40] sm:$0xff]  ;;  %p2422_p4 = pnand %p2421_p3, %p2415_p0 }
  0x41   :  { %v72_v35 = vadd.f32 %v71_v20, %v2752_v17  ;;  %v103_v36 = vsel %vm79_vm0, %v2762_v19, 0.0  ;;  %v131_v37 = vmul.f32 %v2762_v19, %v2762_v19  ;;  %v137_v38 = vadd.f32 %v136_v22, %v124_v21  ;;  %799 = vmatprep.subr.bf16.mxu1 %v2199_v27  ;;  %v2202_v42 = vld [vmem:[%s3685_s6 + $0x24] ss:$8 sps:$4 sm:$0xff]   ;;  %v2815_v48 = vld [vmem:[%s3679_s0 + $0x50] sm:$0xff]  ;;  %v2820_v49 = vld [vmem:[%s3679_s0 + $0x78] sm:$0xff] }
  0x42   :  { %1599 = vperm.xlu1 %2159, %v1155_v1   ;;  %v86_v40 = vadd.f32 %v85_v28, %v84_v23  ;;  %v149_v41 = vadd.f32 %v148_v30, %v147_v24  ;;  %v150_v43 = vsel %vm79_vm0, %v127_v29, 0.0  ;;  %v104_v45 = vadd.f32 %v103_v36, %v102_v31  ;;  %v2204_v54 = vld [vmem:[%s3685_s6 + $0x20] ss:$8 sps:$4 sm:$0xff]   ;;  %v2205_v61 = vld [vmem:[%s3685_s6 + $0x34] ss:$8 sps:$4 sm:$0xff]  }
  0x43   :  { %1594 = vperm.xlu0 %2158, %v1154_v3   ;;  %v105_v46 = vsel %vm79_vm0, %v2790_v34, 0.0  ;;  %v167_v47 = vsel %vm79_vm0, %v129_v33, 0.0  ;;  %v73_v50 = vrot.slane %v72_v35, 4  ;;  %v133_v51 = vmul.f32 %v2790_v34, %v2790_v34  ;;  %v2207_v9 = vld [vmem:[%s3685_s6 + $0x30] ss:$8 sps:$4 sm:$0xff]   ;;  %v2844_v10 = vld [vmem:[%s3679_s0 + $0x60] sm:$0xff] }
  0x44   :  { %v138_v52 = vadd.f32 %v137_v38, %v126_v32  ;;  %v168_v53 = vsel %vm79_vm0, %v131_v37, 0.0  ;;  %800 = vmatpush1.bf16.msra.mxu1 %v2201_v39  ;;  %v87_v55 = vrot.slane %v86_v40, 4  ;;  %v151_v56 = vadd.f32 %v150_v43, %v149_v41  ;;  %v2210_v26 = vld [vmem:[%s3685_s6 + $0x40] ss:$8 sps:$4 sm:$0xff]   ;;  %v2861_v27 = vld [vmem:[%s3679_s0 + $0x70] sm:$0xff] }
  0x45   :  { %801 = vmatprep.subr.bf16.mxu1 %v2202_v42  ;;  %v93_v62 = vadd.f32 %v2815_v48, %v2807_v44  ;;  %v106_v63 = vadd.f32 %v105_v46, %v104_v45  ;;  %v107_v0 = vsel %vm79_vm0, %v2820_v49, 0.0  ;;  %v169_v1 = vadd.f32 %v168_v53, %v167_v47  ;;  %v2211_v32 = vld [vmem:[%s3685_s6 + $0x54] ss:$8 sps:$4 sm:$0xff]   ;;  %v2213_v39 = vld [vmem:[%s3685_s6 + $0x50] ss:$8 sps:$4 sm:$0xff]  }
  0x46   :  { %1609 = vperm.xlu1 %2159, %v1157_v14   ;;  %v74_v3 = vadd.f32 %v73_v50, %v72_v35  ;;  %v135_v5 = vmul.f32 %v2820_v49, %v2820_v49  ;;  %v139_v6 = vrot.slane %v138_v52, 4  ;;  %v170_v7 = vsel %vm79_vm0, %v133_v51, 0.0  ;;  %v2214_v45 = vld [vmem:[%s3685_s6 + $0x64] ss:$8 sps:$4 sm:$0xff]  }
  0x47   :  { %1604 = vperm.xlu0 %2158, %v1156_v15   ;;  %v128_v11 = vmul.f32 %v2807_v44, %v2807_v44  ;;  %v130_v12 = vmul.f32 %v2815_v48, %v2815_v48  ;;  %v88_v13 = vadd.f32 %v87_v55, %v86_v40  ;;  %v152_v14 = vrot.slane %v151_v56, 4  ;;  %v2208_v15 = vld [vmem:[%s3685_s6 + $0x44] ss:$8 sps:$4 sm:$0xff]  }
  0x48   :  { %802 = vmatpush1.bf16.msra.mxu1 %v2204_v54  ;;  %v108_v20 = vadd.f32 %v107_v0, %v106_v63  ;;  %v171_v21 = vadd.f32 %v170_v7, %v169_v1  ;;  %v75_v22 = vrot.slane %v74_v3, 2  ;;  %v94_v23 = vadd.f32 %v93_v62, %v2844_v10 }
  0x49   :  { %803 = vmatprep.subr.bf16.mxu1 %v2205_v61  ;;  %v140_v24 = vadd.f32 %v139_v6, %v138_v52  ;;  %v172_v25 = vsel %vm79_vm0, %v135_v5, 0.0  ;;  %v132_v28 = vmul.f32 %v2844_v10, %v2844_v10  ;;  %v158_v29 = vadd.f32 %v130_v12, %v128_v11  ;;  %v2216_v52 = vld [vmem:[%s3685_s6 + $0x60] ss:$8 sps:$4 sm:$0xff]   ;;  %v2217_v61 = vld [vmem:[%s3685_s6 + $0x74] ss:$8 sps:$4 sm:$0xff]  }
  0x4a   :  { %v89_v30 = vrot.slane %v88_v13, 2  ;;  %v153_v31 = vadd.f32 %v152_v14, %v151_v56  ;;  %v109_v33 = vrot.slane %v108_v20, 4  ;;  %v173_v35 = vadd.f32 %v172_v25, %v171_v21  ;;  %v2220_v11 = vld [vmem:[%s3685_s6 + $0x84] ss:$8 sps:$4 sm:$0xff]   ;;  %v2223_v25 = vld [vmem:[%s3685_s6 + $0x94] ss:$8 sps:$4 sm:$0xff]  }
  0x4b   :  { %v76_v36 = vadd.f32 %v75_v22, %v74_v3  ;;  %v134_v37 = vmul.f32 %v2861_v27, %v2861_v27  ;;  %v141_v38 = vrot.slane %v140_v24, 2  ;;  %v95_v40 = vadd.f32 %v94_v23, %v2861_v27  ;;  %v2219_v3 = vld [vmem:[%s3685_s6 + $0x70] ss:$8 sps:$4 sm:$0xff]  }
  0x4c   :  { %804 = vmatpush1.bf16.msra.mxu1 %v2207_v9  ;;  %v159_v41 = vadd.f32 %v158_v29, %v132_v28  ;;  %v90_v42 = vadd.f32 %v89_v30, %v88_v13  ;;  %v154_v43 = vrot.slane %v153_v31, 2  ;;  %v110_v46 = vadd.f32 %v109_v33, %v108_v20  ;;  %v2222_v20 = vld [vmem:[%s3685_s6 + $0x80] ss:$8 sps:$4 sm:$0xff]  }
  0x4d   :  { %805 = vmatprep.subr.bf16.mxu1 %v2208_v15  ;;  %v174_v47 = vrot.slane %v173_v35, 4  ;;  %v77_v50 = vrot.slane %v76_v36, 1  ;;  %v142_v51 = vadd.f32 %v141_v38, %v140_v24  ;;  %v96_v53 = vrot.slane %v95_v40, 4 }
  0x4e   :  { %v160_v54 = vadd.f32 %v159_v41, %v134_v37  ;;  %v91_v55 = vrot.slane %v90_v42, 1  ;;  %v155_v56 = vadd.f32 %v154_v43, %v153_v31  ;;  %v111_v62 = vrot.slane %v110_v46, 2  ;;  %v2225_v31 = vld [vmem:[%s3685_s6 + $0x90] ss:$8 sps:$4 sm:$0xff]   ;;  %v2226_v37 = vld [vmem:[%s3685_s6 + $0xa4] ss:$8 sps:$4 sm:$0xff]  }
  0x4f   :  { %v175_v63 = vadd.f32 %v174_v47, %v173_v35  ;;  %v78_v0 = vadd.f32 %v77_v50, %v76_v36  ;;  %v143_v1 = vrot.slane %v142_v51, 1  ;;  %v97_v5 = vadd.f32 %v96_v53, %v95_v40  ;;  %v2228_v41 = vld [vmem:[%s3685_s6 + $0xa0] ss:$8 sps:$4 sm:$0xff]  }
  0x50   :  { %806 = vmatpush1.bf16.msra.mxu1 %v2210_v26  ;;  %v161_v6 = vrot.slane %v160_v54, 4  ;;  %v92_v7 = vadd.f32 %v91_v55, %v90_v42  ;;  %v156_v9 = vrot.slane %v155_v56, 1  ;;  %v112_v12 = vadd.f32 %v111_v62, %v110_v46  ;;  %v2229_v46 = vld [vmem:[%s3685_s6 + $0xb4] ss:$8 sps:$4 sm:$0xff]  }
  0x51   :  { %807 = vmatprep.subr.bf16.mxu1 %v2211_v32  ;;  %v176_v13 = vrot.slane %v175_v63, 2  ;;  %v2889_v14 = vmul.f32 0.03125, %v78_v0  ;;  %v144_v15 = vadd.f32 %v143_v1, %v142_v51  ;;  %v98_v21 = vrot.slane %v97_v5, 2 }
  0x52   :  { %v162_v22 = vadd.f32 %v161_v6, %v160_v54  ;;  %v2894_v23 = vmul.f32 0.03125, %v92_v7  ;;  %v157_v24 = vadd.f32 %v156_v9, %v155_v56  ;;  %v113_v26 = vrot.slane %v112_v12, 1  ;;  %v2232_v56 = vld [vmem:[%s3685_s6 + $0xc4] ss:$8 sps:$4 sm:$0xff]  }
  0x53   :  { %v177_v28 = vadd.f32 %v176_v13, %v175_v63  ;;  %v180_v29 = vmul.f32 0.03125, %v144_v15  ;;  %v184_v30 = vmul.f32 %v2889_v14, %v2889_v14  ;;  %v99_v32 = vadd.f32 %v98_v21, %v97_v5  ;;  %v2234_v63 = vld [vmem:[%s3685_s6 + $0xc0] ss:$8 sps:$4 sm:$0xff]  }
  0x54   :  { %808 = vmatpush1.bf16.msra.mxu1 %v2213_v39  ;;  %v163_v33 = vrot.slane %v162_v22, 2  ;;  %v181_v35 = vmul.f32 0.03125, %v157_v24  ;;  %v185_v36 = vmul.f32 %v2894_v23, %v2894_v23  ;;  %v114_v38 = vadd.f32 %v113_v26, %v112_v12 }
  0x55   :  { %809 = vmatprep.subr.bf16.mxu1 %v2214_v45  ;;  %v178_v39 = vrot.slane %v177_v28, 1  ;;  %v188_v40 = vsub.f32 %v180_v29, %v184_v30  ;;  %v100_v42 = vrot.slane %v99_v32, 1  ;;  %v192_v13 = vsub.f32 %v2695_v59, %v2889_v14 }
  0x56   :  { %v164_v43 = vadd.f32 %v163_v33, %v162_v22  ;;  %v189_v45 = vsub.f32 %v181_v35, %v185_v36  ;;  %v2915_v47 = vmul.f32 0.03125, %v114_v38  ;;  %v194_v15 = vsub.f32 %v2700_v60, %v2889_v14 }
  0x57   :  { %v179_v50 = vadd.f32 %v178_v39, %v177_v28  ;;  %v208_v51 = vadd.f32 1e-05, %v188_v40  ;;  %v101_v53 = vadd.f32 %v100_v42, %v99_v32  ;;  %v195_v21 = vsub.f32 %v2690_v58, %v2894_v23 }
  0x58   :  { %810 = vmatpush1.bf16.msra.mxu1 %v2216_v52  ;;  %v2231_v52 = vld [vmem:[%s3685_s6 + $0xb0] ss:$8 sps:$4 sm:$0xff]   ;;  %v165_v54 = vrot.slane %v164_v43, 1  ;;  %v209_v55 = vadd.f32 1e-05, %v189_v45  ;;  %v187_v62 = vmul.f32 %v2915_v47, %v2915_v47  ;;  %v199_v60 = vsub.f32 %v2747_v16, %v2894_v23 }
  0x59   :  { %811 = vmatprep.subr.bf16.mxu1 %v2217_v61  ;;  %v183_v61 = vmul.f32 0.03125, %v179_v50  ;;  %2254 = vrsqrt.f32 %v208_v51  ;;  %v2928_v0 = vmul.f32 0.03125, %v101_v53  ;;  %v203_v58 = vsub.f32 %v2762_v19, %v2915_v47 }
  0x5a   :  { %v166_v1 = vadd.f32 %v165_v54, %v164_v43  ;;  %2256 = vrsqrt.f32 %v209_v55  ;;  %v197_v32 = vsub.f32 %v2719_v4, %v2894_v23  ;;  %v198_v38 = vsub.f32 %v2752_v17, %v2889_v14 }
  0x5b   :  { %v191_v5 = vsub.f32 %v183_v61, %v187_v62  ;;  %v186_v7 = vmul.f32 %v2928_v0, %v2928_v0  ;;  %v196_v16 = vsub.f32 %v2730_v8, %v2889_v14  ;;  %v201_v39 = vsub.f32 %v2757_v18, %v2915_v47 }
  0x5c   :  { %812 = vmatpush1.bf16.msra.mxu1 %v2219_v3  ;;  %v2235_v3 = vld [vmem:[%s3685_s6 + $0xd4] ss:$8 sps:$4 sm:$0xff]   ;;  %v182_v6 = vmul.f32 0.03125, %v166_v1  ;;  %v202_v53 = vsub.f32 %v2815_v48, %v2928_v0  ;;  %v200_v1 = vsub.f32 %v2807_v44, %v2928_v0  ;;  %v207_v48 = vsub.f32 %v2820_v49, %v2915_v47 }
  0x5d   :  { %813 = vmatprep.subr.bf16.mxu1 %v2220_v11  ;;  %v211_v9 = vadd.f32 1e-05, %v191_v5 }
  0x5e   :  { %v190_v11 = vsub.f32 %v182_v6, %v186_v7 }
  0x5f   :  { %2258 = vrsqrt.f32 %v211_v9  ;;  %v205_v9 = vsub.f32 %v2790_v34, %v2915_v47  ;;  %v206_v34 = vsub.f32 %v2861_v27, %v2928_v0  ;;  %v204_v47 = vsub.f32 %v2844_v10, %v2928_v0 }
  0x60   :  { %814 = vmatpush1.bf16.msra.mxu1 %v2222_v20  ;;  %v193_v20 = vsub.f32 %v2685_v57, %v2894_v23  ;;  %v210_v26 = vadd.f32 1e-05, %v190_v11 }
  0x61   :  { %815 = vmatprep.subr.bf16.mxu1 %v2223_v25 }
  0x62   :  { %2260 = vrsqrt.f32 %v210_v26 }
  0x63   :  { %v2255_v12 = vpop.eup %2254 }
  0x64   :  { %816 = vmatpush1.bf16.msra.mxu1 %v2225_v31  ;;  %v2257_v22 = vpop.eup %2256  ;;  %v216_v28 = vmul.f32 %v2255_v12, %v192_v13  ;;  %v218_v29 = vmul.f32 %v2255_v12, %v194_v15  ;;  %v222_v50 = vmul.f32 %v2255_v12, %v198_v38  ;;  %v220_v51 = vmul.f32 %v2255_v12, %v196_v16 }
  0x65   :  { %817 = vmatprep.subr.bf16.mxu1 %v2226_v37  ;;  %v217_v30 = vmul.f32 %v2257_v22, %v193_v20  ;;  %v219_v59 = vmul.f32 %v2257_v22, %v195_v21  ;;  %v223_v40 = vmul.f32 %v2257_v22, %v199_v60  ;;  %v221_v43 = vmul.f32 %v2257_v22, %v197_v32 }
  0x68   :  { %818 = vmatpush1.bf16.msra.mxu1 %v2228_v41 }
  0x69   :  { %819 = vmatprep.subr.bf16.mxu1 %v2229_v46  ;;  %v2259_v23 = vpop.eup %2258 }
  0x6a   :  { %v227_v45 = vmul.f32 %v2259_v23, %v203_v58  ;;  %v225_v8 = vmul.f32 %v2259_v23, %v201_v39  ;;  %v231_v22 = vmul.f32 %v2259_v23, %v207_v48  ;;  %v229_v26 = vmul.f32 %v2259_v23, %v205_v9  ;;  %v2240_v39 = vld [vmem:[%s3685_s6 + $0xe0] ss:$8 sps:$4 sm:$0xff]  }
  0x6b   :  { %v545_v23 = vld [vmem:[%s3687_s8] sm:$0xff] }
  0x6c   :  { %820 = vmatpush1.bf16.msra.mxu1 %v2231_v52 }
  0x6d   :  { %821 = vmatprep.subr.bf16.mxu1 %v2232_v56 }
  0x70   :  { %822 = vmatpush1.bf16.msra.mxu1 %v2234_v63  ;;  %v2261_v63 = vpop.eup %2260 }
  0x71   :  { %823 = vmatprep.subr.bf16.mxu1 %v2235_v3  ;;  %v226_v11 = vmul.f32 %v2261_v63, %v202_v53  ;;  %v224_v21 = vmul.f32 %v2261_v63, %v200_v1 }
  0x81   :  { %v2943_v24 = vpop.permute.xlu1 %270 }
  0x82   :  { %v2945_v25 = vpop.permute.xlu0 %234 }
  0x83   :  { %v252_v33 = vmul.f32 %v2945_v25, %v216_v28  ;;  %v253_v36 = vmul.f32 %v2945_v25, %v217_v30  ;;  %v261_v7 = vmul.f32 %v2945_v25, %v225_v8  ;;  %v260_v49 = vmul.f32 %v2945_v25, %v224_v21 }
  0x85   :  { %v2949_v31 = vpop.permute.xlu1 %275  ;;  %v289_v46 = vadd.f32 %v2943_v24, %v253_v36  ;;  %v288_v17 = vadd.f32 %v2943_v24, %v252_v33  ;;  %v297_v44 = vadd.f32 %v2943_v24, %v261_v7  ;;  %v296_v36 = vadd.f32 %v2943_v24, %v260_v49  ;;  %v2238_v24 = vld [vmem:[%s3685_s6 + $0xe4] ss:$8 sps:$4 sm:$0xff]  }
  0x86   :  { %v240_v57 = vpop.permute.xlu0 %239 }
  0x87   :  { %v254_v35 = vmul.f32 %v240_v57, %v218_v29  ;;  %v255_v37 = vmul.f32 %v240_v57, %v219_v59  ;;  %v263_v61 = vmul.f32 %v240_v57, %v227_v45  ;;  %v262_v28 = vmul.f32 %v240_v57, %v226_v11 }
  0x88   :  { %v230_v57 = vmul.f32 %v2261_v63, %v206_v34 }
  0x89   :  { %v291_v19 = vadd.f32 %v2949_v31, %v255_v37  ;;  %v290_v4 = vadd.f32 %v2949_v31, %v254_v35  ;;  %v250_v41 = vpop.permute.xlu1 %249  ;;  %v299_v20 = vadd.f32 %v2949_v31, %v263_v61  ;;  %v298_v58 = vadd.f32 %v2949_v31, %v262_v28  ;;  %v2237_v31 = vld [vmem:[%s3685_s6 + $0xd0] ss:$8 sps:$4 sm:$0xff]  }
  0x8a   :  { %v245_v42 = vpop.permute.xlu0 %244  ;;  %v259_v14 = vmul.f32 %v250_v41, %v223_v40  ;;  %v258_v3 = vmul.f32 %v250_v41, %v222_v50  ;;  %v267_v59 = vmul.f32 %v250_v41, %v231_v22  ;;  %v228_v35 = vmul.f32 %v2261_v63, %v204_v47  ;;  %824 = vmatpush1.bf16.msra.mxu1 %v2237_v31  ;;  %v2241_v40 = vld [vmem:[%s3685_s6 + $0xf4] ss:$8 sps:$4 sm:$0xff]  }
  0x8b   :  { %v305_v52 = vpack.c.bf16 %v291_v19, %v289_v46  ;;  %v304_v18 = vpack.c.bf16 %v290_v4, %v288_v17  ;;  %v257_v54 = vmul.f32 %v245_v42, %v221_v43  ;;  %v256_v5 = vmul.f32 %v245_v42, %v220_v51  ;;  %825 = vmatprep.subr.bf16.mxu1 %v2238_v24  ;;  %v2243_v19 = vld [vmem:[%s3685_s6 + $0xf0] ss:$8 sps:$4 sm:$0xff]   ;;  %v541_v4 = vld [vmem:[%s3686_s7] sm:$0xff]  ;;  %v546_v43 = vld [vmem:[%s3687_s8 + $0x8] sm:$0xff] }
  0x8c   :  { %v309_v30 = vpack.c.bf16 %v299_v20, %v297_v44  ;;  %v265_v60 = vmul.f32 %v245_v42, %v229_v26  ;;  %v308_v25 = vpack.c.bf16 %v298_v58, %v296_v36  ;;  %v266_v38 = vmul.f32 %v250_v41, %v230_v57  ;;  %v547_v63 = vld [vmem:[%s3687_s8 + $0x10] sm:$0xff] }
  0x8d   :  { %v286_v55 = vpop.permute.xlu1 %285  ;;  %2092 = vmatprep.mubr.msk.bf16.mxu0 %vm79_vm0, %v305_v52  ;;  %v264_v27 = vmul.f32 %v245_v42, %v228_v35  ;;  %v542_v42 = vld [vmem:[%s3686_s7 + $0x8] sm:$0xff] }
  0x8e   :  { %v281_v56 = vpop.permute.xlu0 %280  ;;  %v295_v62 = vadd.f32 %v286_v55, %v259_v14  ;;  %501 = vmatmul.mubr.bf16.vlgmr.msra.gmra.mrb[0].mxu0 %v304_v18  ;;  %v294_v12 = vadd.f32 %v286_v55, %v258_v3  ;;  %v303_v32 = vadd.f32 %v286_v55, %v267_v59  ;;  %v302_v10 = vadd.f32 %v286_v55, %v266_v38 }
  0x8f   :  { %v293_v6 = vadd.f32 %v281_v56, %v257_v54  ;;  %v292_v13 = vadd.f32 %v281_v56, %v256_v5  ;;  %v301_v33 = vadd.f32 %v281_v56, %v265_v60  ;;  %v300_v0 = vadd.f32 %v281_v56, %v264_v27  ;;  %826 = vmatpush1.bf16.msra.mxu1 %v2240_v39  ;;  %v544_v5 = vld [vmem:[%s3686_s7 + $0x18] sm:$0xff] }
  0x90   :  { %827 = vmatprep.subr.bf16.mxu1 %v2241_v40 }
  0x91   :  { %v307_v15 = vpack.c.bf16 %v295_v62, %v293_v6  ;;  %v306_v29 = vpack.c.bf16 %v294_v12, %v292_v13  ;;  %v311_v37 = vpack.c.bf16 %v303_v32, %v301_v33  ;;  %v310_v16 = vpack.c.bf16 %v302_v10, %v300_v0  ;;  %v543_v62 = vld [vmem:[%s3686_s7 + $0x10] sm:$0xff]  ;;  %v548_v6 = vld [vmem:[%s3687_s8 + $0x18] sm:$0xff] }
  0x93   :  { %2093 = vmatprep.mubr.msk.bf16.mxu0 %vm79_vm0, %v307_v15  ;;  %828 = vmatpush1.bf16.msra.mxu1 %v2243_v19 }
  0x96   :  { %511 = vmatmul.mubr.bf16.gmra.mrb[4].mxu0 %v306_v29 }
  0x97   :  { %2094 = vmatprep.mubr.msk.bf16.mxu0 %vm79_vm0, %v309_v30 }
  0x9e   :  { %521 = vmatmul.mubr.bf16.gmra.mrb[8].mxu0 %v308_v25 }
  0x9f   :  { %2095 = vmatprep.mubr.msk.bf16.mxu0 %vm79_vm0, %v311_v37 }
  0xa6   :  { %531 = vmatmul.mubr.bf16.gmra.mrb[12].mxu0 %v310_v16 }
  0xa7   :  { %1335 = vmatprep.mubr.bf16.mxu0 %v3693_v2 }
 0x161   :  { %v502_v41 = vpop.f32.mrb[0].mxu0 }
 0x162   :  { %v549_v45 = vmul.f32 %v541_v4, %v502_v41  ;;  %v573_v46 = vmul.f32 %v545_v23, %v502_v41  ;;  %v504_v17 = vpop.f32.mrb[1].mxu0 }
 0x163   :  { %v557_v50 = vmul.f32 %v545_v23, %v504_v17  ;;  %v581_v51 = vmul.f32 %v541_v4, %v504_v17  ;;  %v506_v8 = vpop.f32.mrb[2].mxu0 }
 0x164   :  { %v550_v14 = vmul.f32 %v542_v42, %v506_v8  ;;  %v574_v52 = vmul.f32 %v546_v43, %v506_v8  ;;  %v508_v18 = vpop.f32.mrb[3].mxu0 }
 0x165   :  { %v565_v53 = vsub.f32 %v549_v45, %v557_v50  ;;  %v558_v54 = vmul.f32 %v546_v43, %v508_v18  ;;  %v582_v55 = vmul.f32 %v542_v42, %v508_v18  ;;  %v589_v56 = vadd.f32 %v581_v51, %v573_v46 }
 0x167   :  { %v566_v61 = vsub.f32 %v550_v14, %v558_v54  ;;  %v590_v1 = vadd.f32 %v582_v55, %v574_v52 }
 0x169   :  { %v512_v3 = vpop.f32.mrb[4].mxu0  ;;  %v598_v7 = vpack.c.bf16 %v590_v1, %v589_v56  ;;  %v597_v48 = vpack.c.bf16 %v566_v61, %v565_v53 }
 0x16a   :  { %v551_v9 = vmul.f32 %v543_v62, %v512_v3  ;;  %v575_v11 = vmul.f32 %v547_v63, %v512_v3  ;;  %v514_v12 = vpop.f32.mrb[5].mxu0 }
 0x16b   :  { %v559_v13 = vmul.f32 %v547_v63, %v514_v12  ;;  %v583_v15 = vmul.f32 %v543_v62, %v514_v12  ;;  %v516_v20 = vpop.f32.mrb[6].mxu0  ;;  %829 = vmatprep.mubr.bf16.mxu1 %v598_v7 }
 0x16c   :  { %v552_v21 = vmul.f32 %v544_v5, %v516_v20  ;;  %v576_v44 = vmul.f32 %v548_v6, %v516_v20  ;;  %v518_v22 = vpop.f32.mrb[7].mxu0  ;;  %830 = vmatmul.mubr.bf16.vlgmr.msra.gmra.mrb[0].mxu1 %v597_v48 }
 0x16d   :  { %v567_v26 = vsub.f32 %v551_v9, %v559_v13  ;;  %v591_v28 = vadd.f32 %v583_v15, %v575_v11  ;;  %v560_v29 = vmul.f32 %v548_v6, %v518_v22  ;;  %v584_v30 = vmul.f32 %v544_v5, %v518_v22 }
 0x16f   :  { %v568_v49 = vsub.f32 %v552_v21, %v560_v29  ;;  %v592_v34 = vadd.f32 %v584_v30, %v576_v44 }
 0x171   :  { %v522_v47 = vpop.f32.mrb[8].mxu0  ;;  %v600_v59 = vpack.c.bf16 %v592_v34, %v591_v28  ;;  %v599_v60 = vpack.c.bf16 %v568_v49, %v567_v26 }
 0x172   :  { %v553_v58 = vmul.f32 %v541_v4, %v522_v47  ;;  %v577_v32 = vmul.f32 %v545_v23, %v522_v47  ;;  %v524_v33 = vpop.f32.mrb[9].mxu0 }
 0x173   :  { %v561_v57 = vmul.f32 %v545_v23, %v524_v33  ;;  %v585_v35 = vmul.f32 %v541_v4, %v524_v33  ;;  %v526_v36 = vpop.f32.mrb[10].mxu0  ;;  %839 = vmatprep.mubr.bf16.mxu1 %v600_v59 }
 0x174   :  { %v554_v25 = vmul.f32 %v542_v42, %v526_v36  ;;  %v578_v37 = vmul.f32 %v546_v43, %v526_v36  ;;  %v528_v38 = vpop.f32.mrb[11].mxu0  ;;  %840 = vmatmul.mubr.bf16.gmra.mrb[4].mxu1 %v599_v60 }
 0x175   :  { %v569_v27 = vsub.f32 %v553_v58, %v561_v57  ;;  %v593_v10 = vadd.f32 %v585_v35, %v577_v32  ;;  %v562_v0 = vmul.f32 %v546_v43, %v528_v38  ;;  %v586_v16 = vmul.f32 %v542_v42, %v528_v38 }
 0x177   :  { %v570_v31 = vsub.f32 %v554_v25, %v562_v0  ;;  %v594_v24 = vadd.f32 %v586_v16, %v578_v37 }
 0x179   :  { %v532_v39 = vpop.f32.mrb[12].mxu0  ;;  %v602_v40 = vpack.c.bf16 %v594_v24, %v593_v10  ;;  %v601_v19 = vpack.c.bf16 %v570_v31, %v569_v27 }
 0x17a   :  { %v555_v41 = vmul.f32 %v543_v62, %v532_v39  ;;  %v579_v45 = vmul.f32 %v547_v63, %v532_v39  ;;  %v534_v46 = vpop.f32.mrb[13].mxu0 }
 0x17b   :  { %v563_v23 = vmul.f32 %v547_v63, %v534_v46  ;;  %v587_v4 = vmul.f32 %v543_v62, %v534_v46  ;;  %v536_v17 = vpop.f32.mrb[14].mxu0  ;;  %849 = vmatprep.mubr.bf16.mxu1 %v602_v40 }
 0x17c   :  { %v556_v50 = vmul.f32 %v544_v5, %v536_v17  ;;  %v580_v51 = vmul.f32 %v548_v6, %v536_v17  ;;  %v538_v8 = vpop.f32.mrb[15].mxu0  ;;  %850 = vmatmul.mubr.bf16.gmra.mrb[8].mxu1 %v601_v19 }
 0x17d   :  { %v571_v14 = vsub.f32 %v555_v41, %v563_v23  ;;  %v595_v52 = vadd.f32 %v587_v4, %v579_v45  ;;  %v564_v43 = vmul.f32 %v548_v6, %v538_v8  ;;  %v588_v42 = vmul.f32 %v544_v5, %v538_v8 }
 0x17f   :  { %v572_v18 = vsub.f32 %v556_v50, %v564_v43  ;;  %v596_v53 = vadd.f32 %v588_v42, %v580_v51 }
 0x181   :  { %v604_v54 = vpack.c.bf16 %v596_v53, %v595_v52  ;;  %v603_v55 = vpack.c.bf16 %v572_v18, %v571_v14 }
 0x183   :  { %859 = vmatprep.mubr.bf16.mxu1 %v604_v54 }
 0x184   :  { %860 = vmatmul.mubr.bf16.gmra.mrb[12].mxu1 %v603_v55 }
 0x185   :  { %1656 = vmatprep.mubr.bf16.mxu1 %v3693_v2 }
 0x23f   :  { %v3030_v56 = vpop.f32.mrb[0].mxu1 }
 0x240   :  { %v3032_v61 = vpop.f32.mrb[1].mxu1  ;;  %v926_v1 = vmul.f32 %v3030_v56, %v3030_v56 }
 0x241   :  { %v927_v62 = vmul.f32 %v3032_v61, %v3032_v61  ;;  %v3036_v63 = vpop.f32.mrb[2].mxu1  ;;  %v887_v7 = vsel %vm79_vm0, %v3032_v61, 0.0 }
 0x242   :  { %v878_v3 = vadd.f32 %v3036_v63, %v3030_v56  ;;  %v928_v5 = vmul.f32 %v3036_v63, %v3036_v63  ;;  %v3044_v6 = vpop.f32.mrb[3].mxu1 }
 0x243   :  { %v888_v48 = vsel %vm79_vm0, %v3044_v6, 0.0  ;;  %v929_v9 = vmul.f32 %v3044_v6, %v3044_v6  ;;  %v951_v13 = vsel %vm79_vm0, %v927_v62, 0.0 }
 0x244   :  { %v942_v11 = vadd.f32 %v928_v5, %v926_v1  ;;  %v889_v12 = vadd.f32 %v888_v48, %v887_v7 }
 0x245   :  { %v952_v15 = vsel %vm79_vm0, %v929_v9, 0.0 }
 0x246   :  { %v953_v20 = vadd.f32 %v952_v15, %v951_v13 }
 0x247   :  { %v3054_v21 = vpop.f32.mrb[4].mxu1 }
 0x248   :  { %v879_v44 = vadd.f32 %v878_v3, %v3054_v21  ;;  %v930_v22 = vmul.f32 %v3054_v21, %v3054_v21  ;;  %v3059_v26 = vpop.f32.mrb[5].mxu1 }
 0x249   :  { %v890_v28 = vsel %vm79_vm0, %v3059_v26, 0.0  ;;  %v931_v29 = vmul.f32 %v3059_v26, %v3059_v26  ;;  %v3065_v30 = vpop.f32.mrb[6].mxu1 }
 0x24a   :  { %v943_v49 = vadd.f32 %v942_v11, %v930_v22  ;;  %v891_v34 = vadd.f32 %v890_v28, %v889_v12  ;;  %v880_v47 = vadd.f32 %v879_v44, %v3065_v30  ;;  %v932_v59 = vmul.f32 %v3065_v30, %v3065_v30  ;;  %v3070_v60 = vpop.f32.mrb[7].mxu1 }
 0x24b   :  { %v954_v58 = vsel %vm79_vm0, %v931_v29, 0.0  ;;  %v892_v32 = vsel %vm79_vm0, %v3070_v60, 0.0  ;;  %v933_v33 = vmul.f32 %v3070_v60, %v3070_v60 }
 0x24c   :  { %v955_v57 = vadd.f32 %v954_v58, %v953_v20  ;;  %v881_v35 = vrot.slane %v880_v47, 4  ;;  %v944_v36 = vadd.f32 %v943_v49, %v932_v59  ;;  %v893_v25 = vadd.f32 %v892_v32, %v891_v34 }
 0x24d   :  { %v956_v37 = vsel %vm79_vm0, %v933_v33, 0.0 }
 0x24e   :  { %v882_v38 = vadd.f32 %v881_v35, %v880_v47  ;;  %v945_v27 = vrot.slane %v944_v36, 4  ;;  %v894_v10 = vrot.slane %v893_v25, 4  ;;  %v957_v0 = vadd.f32 %v956_v37, %v955_v57 }
 0x24f   :  { %v3078_v16 = vpop.f32.mrb[8].mxu1 }
 0x250   :  { %v883_v31 = vrot.slane %v882_v38, 2  ;;  %v946_v24 = vadd.f32 %v945_v27, %v944_v36  ;;  %v895_v39 = vadd.f32 %v894_v10, %v893_v25  ;;  %v958_v40 = vrot.slane %v957_v0, 4  ;;  %v3080_v19 = vpop.f32.mrb[9].mxu1 }
 0x251   :  { %v934_v41 = vmul.f32 %v3078_v16, %v3078_v16  ;;  %v909_v45 = vsel %vm79_vm0, %v3080_v19, 0.0  ;;  %v3086_v46 = vpop.f32.mrb[10].mxu1  ;;  %v935_v8 = vmul.f32 %v3080_v19, %v3080_v19 }
 0x252   :  { %v884_v23 = vadd.f32 %v883_v31, %v882_v38  ;;  %v947_v4 = vrot.slane %v946_v24, 2  ;;  %v896_v17 = vrot.slane %v895_v39, 2  ;;  %v959_v50 = vadd.f32 %v958_v40, %v957_v0  ;;  %v3088_v51 = vpop.f32.mrb[11].mxu1 }
 0x253   :  { %v900_v14 = vadd.f32 %v3086_v46, %v3078_v16  ;;  %v936_v52 = vmul.f32 %v3086_v46, %v3086_v46  ;;  %v910_v43 = vsel %vm79_vm0, %v3088_v51, 0.0  ;;  %v937_v1 = vmul.f32 %v3088_v51, %v3088_v51 }
 0x254   :  { %v885_v42 = vrot.slane %v884_v23, 1  ;;  %v948_v18 = vadd.f32 %v947_v4, %v946_v24  ;;  %v897_v53 = vadd.f32 %v896_v17, %v895_v39  ;;  %v960_v54 = vrot.slane %v959_v50, 2  ;;  %v3135_v4 = vpop.permute.xlu1 %1045 }
 0x255   :  { %v964_v55 = vadd.f32 %v936_v52, %v934_v41  ;;  %v911_v62 = vadd.f32 %v910_v43, %v909_v45  ;;  %v973_v9 = vsel %vm79_vm0, %v935_v8, 0.0  ;;  %v974_v11 = vsel %vm79_vm0, %v937_v1, 0.0 }
 0x256   :  { %v886_v3 = vadd.f32 %v885_v42, %v884_v23  ;;  %v949_v5 = vrot.slane %v948_v18, 1  ;;  %v898_v7 = vrot.slane %v897_v53, 1  ;;  %v961_v48 = vadd.f32 %v960_v54, %v959_v50 }
 0x257   :  { %v3102_v12 = vpop.f32.mrb[12].mxu1  ;;  %v975_v28 = vadd.f32 %v974_v11, %v973_v9 }
 0x258   :  { %v3104_v13 = vmul.f32 0.03125, %v886_v3  ;;  %v950_v15 = vadd.f32 %v949_v5, %v948_v18  ;;  %v899_v20 = vadd.f32 %v898_v7, %v897_v53  ;;  %v962_v44 = vrot.slane %v961_v48, 1  ;;  %v3106_v22 = vpop.f32.mrb[13].mxu1  ;;  %v3143_v18 = vpop.permute.xlu0 %1040 }
 0x259   :  { %v901_v29 = vadd.f32 %v900_v14, %v3102_v12  ;;  %v938_v49 = vmul.f32 %v3102_v12, %v3102_v12  ;;  %v912_v34 = vsel %vm79_vm0, %v3106_v22, 0.0  ;;  %v3113_v47 = vpop.f32.mrb[14].mxu1  ;;  %v939_v37 = vmul.f32 %v3106_v22, %v3106_v22 }
 0x25a   :  { %v986_v59 = vmul.f32 0.03125, %v950_v15  ;;  %v990_v58 = vmul.f32 %v3104_v13, %v3104_v13  ;;  %v1004_v32 = vsub.f32 %v3065_v30, %v3104_v13  ;;  %v3119_v33 = vmul.f32 0.03125, %v899_v20  ;;  %v3121_v57 = vpop.f32.mrb[15].mxu1  ;;  %v3154_v20 = vpop.permute.xlu1 %1081 }
 0x25b   :  { %v963_v35 = vadd.f32 %v962_v44, %v961_v48  ;;  %v965_v36 = vadd.f32 %v964_v55, %v938_v49  ;;  %v913_v25 = vadd.f32 %v912_v34, %v911_v62  ;;  %v902_v0 = vadd.f32 %v901_v29, %v3113_v47 }
 0x25c   :  { %v994_v38 = vsub.f32 %v986_v59, %v990_v58  ;;  %v991_v27 = vmul.f32 %v3119_v33, %v3119_v33  ;;  %v1005_v10 = vsub.f32 %v3070_v60, %v3119_v33  ;;  %v976_v31 = vsel %vm79_vm0, %v939_v37, 0.0  ;;  %v3156_v49 = vpop.permute.xlu0 %1076 }
 0x25d   :  { %v987_v30 = vmul.f32 0.03125, %v963_v35  ;;  %v940_v24 = vmul.f32 %v3113_v47, %v3113_v47  ;;  %v914_v39 = vsel %vm79_vm0, %v3121_v57, 0.0  ;;  %v977_v41 = vadd.f32 %v976_v31, %v975_v28 }
 0x25e   :  { %v1014_v40 = vadd.f32 1e-05, %v994_v38  ;;  %v903_v45 = vrot.slane %v902_v0, 4  ;;  %v915_v23 = vadd.f32 %v914_v39, %v913_v25  ;;  %v941_v8 = vmul.f32 %v3121_v57, %v3121_v57  ;;  %v3160_v25 = vpop.permute.xlu1 %1055 }
 0x25f   :  { %v995_v17 = vsub.f32 %v987_v30, %v991_v27  ;;  %v966_v50 = vadd.f32 %v965_v36, %v940_v24  ;;  %v999_v14 = vsub.f32 %v3032_v61, %v3119_v33  ;;  %v1001_v42 = vsub.f32 %v3044_v6, %v3119_v33 }
 0x260   :  { %2262 = vrsqrt.f32 %v1014_v40  ;;  %v904_v52 = vadd.f32 %v903_v45, %v902_v0  ;;  %v916_v43 = vrot.slane %v915_v23, 4  ;;  %v978_v55 = vsel %vm79_vm0, %v941_v8, 0.0 }
 0x261   :  { %v1015_v53 = vadd.f32 1e-05, %v995_v17  ;;  %v967_v54 = vrot.slane %v966_v50, 4  ;;  %v998_v62 = vsub.f32 %v3030_v56, %v3104_v13  ;;  %v979_v5 = vadd.f32 %v978_v55, %v977_v41  ;;  %v3168_v41 = vpop.permute.xlu0 %1050 }
 0x262   :  { %v905_v1 = vrot.slane %v904_v52, 2  ;;  %v917_v3 = vadd.f32 %v916_v43, %v915_v23  ;;  %v1000_v61 = vsub.f32 %v3036_v63, %v3104_v13  ;;  %v1003_v6 = vsub.f32 %v3059_v26, %v3119_v33  ;;  %v3183_v60 = vpop.permute.xlu1 %1091 }
 0x263   :  { %2264 = vrsqrt.f32 %v1015_v53  ;;  %v968_v7 = vadd.f32 %v967_v54, %v966_v50  ;;  %v1002_v48 = vsub.f32 %v3054_v21, %v3104_v13  ;;  %v980_v15 = vrot.slane %v979_v5, 4 }
 0x264   :  { %v906_v9 = vadd.f32 %v905_v1, %v904_v52  ;;  %v918_v11 = vrot.slane %v917_v3, 2 }
 0x265   :  { %v969_v56 = vrot.slane %v968_v7, 2  ;;  %v981_v29 = vadd.f32 %v980_v15, %v979_v5 }
 0x266   :  { %v907_v44 = vrot.slane %v906_v9, 1  ;;  %v919_v28 = vadd.f32 %v918_v11, %v917_v3  ;;  %v1087_v11 = vpop.permute.xlu0 %1086 }
 0x267   :  { %v970_v63 = vadd.f32 %v969_v56, %v968_v7  ;;  %v982_v58 = vrot.slane %v981_v29, 2 }
 0x268   :  { %v908_v34 = vadd.f32 %v907_v44, %v906_v9  ;;  %v920_v59 = vrot.slane %v919_v28, 1 }
 0x269   :  { %v971_v35 = vrot.slane %v970_v63, 1  ;;  %v983_v13 = vadd.f32 %v982_v58, %v981_v29 }
 0x26a   :  { %v2263_v26 = vpop.eup %2262  ;;  %v3158_v36 = vmul.f32 0.03125, %v908_v34  ;;  %v921_v21 = vadd.f32 %v920_v59, %v919_v28 }
 0x26b   :  { %v1028_v37 = vmul.f32 %v2263_v26, %v1004_v32  ;;  %v972_v38 = vadd.f32 %v971_v35, %v970_v63  ;;  %v1022_v27 = vmul.f32 %v2263_v26, %v998_v62  ;;  %v1024_v0 = vmul.f32 %v2263_v26, %v1000_v61 }
 0x26c   :  { %v992_v30 = vmul.f32 %v3158_v36, %v3158_v36  ;;  %v1012_v31 = vsub.f32 %v3113_v47, %v3158_v36  ;;  %v3166_v24 = vmul.f32 0.03125, %v921_v21  ;;  %v984_v39 = vrot.slane %v983_v13, 1 }
 0x26d   :  { %v2265_v40 = vpop.eup %2264  ;;  %v1064_v45 = vmul.f32 %v3160_v25, %v1028_v37  ;;  %v988_v23 = vmul.f32 0.03125, %v972_v38  ;;  %v1058_v32 = vmul.f32 %v3143_v18, %v1022_v27  ;;  %v1060_v17 = vmul.f32 %v3135_v4, %v1024_v0 }
 0x26e   :  { %v1029_v50 = vmul.f32 %v2265_v40, %v1005_v10  ;;  %v985_v8 = vadd.f32 %v984_v39, %v983_v13  ;;  %v993_v47 = vmul.f32 %v3166_v24, %v3166_v24  ;;  %v1013_v52 = vsub.f32 %v3121_v57, %v3166_v24 }
 0x26f   :  { %v996_v43 = vsub.f32 %v988_v23, %v992_v30  ;;  %v1023_v53 = vmul.f32 %v2265_v40, %v999_v14  ;;  %v1025_v54 = vmul.f32 %v2265_v40, %v1001_v42  ;;  %v1094_v55 = vadd.f32 %v3156_v49, %v1058_v32 }
 0x270   :  { %v1065_v62 = vmul.f32 %v3160_v25, %v1029_v50  ;;  %v989_v1 = vmul.f32 0.03125, %v985_v8  ;;  %v1096_v3 = vadd.f32 %v3154_v20, %v1060_v17  ;;  %v1027_v5 = vmul.f32 %v2265_v40, %v1003_v6  ;;  %v3232_v8 = vld [vmem:[%s3688_s9 + $0x8] sm:$0xff]  }
 0x271   :  { %v1016_v33 = vadd.f32 1e-05, %v996_v43  ;;  %v1059_v10 = vmul.f32 %v3143_v18, %v1023_v53  ;;  %v1061_v61 = vmul.f32 %v3135_v4, %v1025_v54  ;;  %v1026_v7 = vmul.f32 %v2263_v26, %v1002_v48 }
 0x272   :  { %v997_v57 = vsub.f32 %v989_v1, %v993_v47  ;;  %v1110_v9 = vpack.c.bf16 %v1096_v3, %v1094_v55  ;;  %v1063_v14 = vmul.f32 %v3168_v41, %v1027_v5  ;;  %v1101_v42 = vadd.f32 %v3183_v60, %v1065_v62  ;;  %v3278_v1 = vld [vmem:[%s3688_s9 + $0x20] sm:$0xff]   ;;  %v3286_v3 = vld [vmem:[%s3688_s9 + $0x28] sm:$0xff]   ;;  %v3294_v5 = vld [vmem:[%s3688_s9 + $0x30] sm:$0xff]  }
 0x273   :  { %2266 = vrsqrt.f32 %v1016_v33  ;;  %v1095_v15 = vadd.f32 %v3156_v49, %v1059_v10  ;;  %v1097_v6 = vadd.f32 %v3154_v20, %v1061_v61  ;;  %v1062_v56 = vmul.f32 %v3168_v41, %v1026_v7  ;;  %v3307_v33 = vpop.permute.xlu0 %1160 }
 0x274   :  { %v1017_v44 = vadd.f32 1e-05, %v997_v57  ;;  %v1099_v28 = vadd.f32 %v1087_v11, %v1063_v14  ;;  %v1100_v29 = vadd.f32 %v3183_v60, %v1064_v45  ;;  %v1007_v48 = vsub.f32 %v3080_v19, %v3166_v24  ;;  %v3310_v57 = vpop.permute.xlu1 %1165 }
 0x275   :  { %v1111_v63 = vpack.c.bf16 %v1097_v6, %v1095_v15  ;;  %v1098_v34 = vadd.f32 %v1087_v11, %v1062_v56  ;;  %v1009_v59 = vsub.f32 %v3088_v51, %v3166_v24  ;;  %v1006_v58 = vsub.f32 %v3078_v16, %v3158_v36  ;;  %v3208_v51 = vld [vmem:[%s3688_s9] sm:$0xff]  }
 0x276   :  { %2268 = vrsqrt.f32 %v1017_v44  ;;  %v1113_v35 = vpack.c.bf16 %v1101_v42, %v1099_v28  ;;  %v1008_v26 = vsub.f32 %v3086_v46, %v3158_v36  ;;  %v1011_v21 = vsub.f32 %v3106_v22, %v3166_v24 }
 0x277   :  { %1303 = vmatprep.subr.bf16.mxu0 %v1111_v63  ;;  %v1112_v13 = vpack.c.bf16 %v1100_v29, %v1098_v34  ;;  %v1010_v19 = vsub.f32 %v3102_v12, %v3158_v36  ;;  %v3315_v29 = vpop.permute.xlu0 %1170 }
 0x278   :  { %1304 = vmatpush1.bf16.msra.mxu0 %v1110_v9 }
 0x279   :  { %1305 = vmatprep.subr.bf16.mxu0 %v1113_v35 }
 0x27c   :  { %1306 = vmatpush1.bf16.msra.mxu0 %v1112_v13 }
 0x27d   :  { %v2267_v16 = vpop.eup %2266 }
 0x27e   :  { %v1036_v37 = vmul.f32 %v2267_v16, %v1012_v31  ;;  %v1030_v46 = vmul.f32 %v2267_v16, %v1006_v58  ;;  %v1032_v38 = vmul.f32 %v2267_v16, %v1008_v26  ;;  %v1034_v27 = vmul.f32 %v2267_v16, %v1010_v19 }
 0x27f   :  { %2136 = vmatmul.mubr.msk.bf16.vlgmr.msra.gmra.mrb[16].mxu0 %vm1278_vm1, %v3208_v51 }
 0x280   :  { %v2269_v22 = vpop.eup %2268  ;;  %v1072_v12 = vmul.f32 %v3160_v25, %v1036_v37  ;;  %1345 = vmatprep.mubr.bf16.mxu0 %v3693_v2  ;;  %v1066_v36 = vmul.f32 %v3143_v18, %v1030_v46  ;;  %v1068_v0 = vmul.f32 %v3135_v4, %v1032_v38  ;;  %v1070_v30 = vmul.f32 %v3168_v41, %v1034_v27 }
 0x281   :  { %v1037_v24 = vmul.f32 %v2269_v22, %v1013_v52  ;;  %v1031_v39 = vmul.f32 %v2269_v22, %v1007_v48  ;;  %v1033_v31 = vmul.f32 %v2269_v22, %v1009_v59  ;;  %v1035_v40 = vmul.f32 %v2269_v22, %v1011_v21  ;;  %v3318_v59 = vpop.permute.xlu1 %1175  ;;  %v3326_v22 = vpop.permute.xlu0 %1180 }
 0x282   :  { %v3218_v45 = vadd.f32 %v3156_v49, %v1066_v36  ;;  %v3221_v23 = vadd.f32 %v3154_v20, %v1068_v0  ;;  %v3223_v32 = vadd.f32 %v1087_v11, %v1070_v30  ;;  %v3226_v17 = vadd.f32 %v3183_v60, %v1072_v12 }
 0x283   :  { %v1073_v50 = vmul.f32 %v3160_v25, %v1037_v24  ;;  %v1067_v47 = vmul.f32 %v3143_v18, %v1031_v39  ;;  %v1069_v52 = vmul.f32 %v3135_v4, %v1033_v31  ;;  %v1071_v43 = vmul.f32 %v3168_v41, %v1035_v40 }
 0x285   :  { %v3242_v55 = vadd.f32 %v3156_v49, %v1067_v47  ;;  %v3245_v25 = vadd.f32 %v3154_v20, %v1069_v52  ;;  %v3247_v62 = vadd.f32 %v1087_v11, %v1071_v43  ;;  %v3250_v18 = vadd.f32 %v3183_v60, %v1073_v50  ;;  %v3262_v20 = vld [vmem:[%s3688_s9 + $0x10] sm:$0xff]   ;;  %v3270_v49 = vld [vmem:[%s3688_s9 + $0x18] sm:$0xff]  }
 0x286   :  { %v3302_v60 = vld [vmem:[%s3688_s9 + $0x38] sm:$0xff]  }
 0x287   :  { %2137 = vmatmul.mubr.msk.bf16.gmra.mrb[20].mxu0 %vm1278_vm1, %v3232_v8 }
 0x288   :  { %1355 = vmatprep.mubr.bf16.mxu0 %v3693_v2 }
 0x28f   :  { %2138 = vmatmul.mubr.msk.bf16.gmra.mrb[24].mxu0 %vm1278_vm1, %v3262_v20 }
 0x290   :  { %1365 = vmatprep.mubr.bf16.mxu0 %v3693_v2 }
 0x297   :  { %2139 = vmatmul.mubr.msk.bf16.gmra.mrb[28].mxu0 %vm1278_vm1, %v3270_v49 }
 0x298   :  { %1375 = vmatprep.mubr.bf16.mxu0 %v3693_v2 }
 0x29f   :  { %2140 = vmatmul.mubr.msk.bf16.gmra.mrb[32].mxu0 %vm1278_vm1, %v3278_v1 }
 0x2a0   :  { %1385 = vmatprep.mubr.bf16.mxu0 %v3693_v2 }
 0x2a7   :  { %2141 = vmatmul.mubr.msk.bf16.gmra.mrb[36].mxu0 %vm1278_vm1, %v3286_v3 }
 0x2a8   :  { %1395 = vmatprep.mubr.bf16.mxu0 %v3693_v2 }
 0x2af   :  { %2142 = vmatmul.mubr.msk.bf16.gmra.mrb[40].mxu0 %vm1278_vm1, %v3294_v5 }
 0x2b0   :  { %1405 = vmatprep.mubr.bf16.mxu0 %v3693_v2 }
 0x2b7   :  { %2143 = vmatmul.mubr.msk.bf16.gmra.mrb[44].mxu0 %vm1278_vm1, %v3302_v60 }
 0x2b8   :  { %2014 = vmatprep.mubr.bf16.mxu0 %v3693_v2 }
 0x352   :  { %v1337_v10 = vpop.f32.mrb[16].mxu0 }
 0x353   :  { %v1338_v61 = vadd.f32 %v1337_v10, %v3307_v33  ;;  %v1339_v7 = vpop.f32.mrb[17].mxu0  ;;  %v3334_v10 = vpop.permute.xlu1 %1185 }
 0x354   :  { %v1340_v9 = vadd.f32 %v1339_v7, %v3307_v33  ;;  %v1341_v14 = vpop.f32.mrb[18].mxu0 }
 0x355   :  { %v1448_v42 = vmul.f32 0.70710677, %v1338_v61  ;;  %v1342_v11 = vadd.f32 %v1341_v14, %v3310_v57  ;;  %v1343_v15 = vpop.f32.mrb[19].mxu0  ;;  %v1416_v40 = vmul.f32 0.5, %v1338_v61 }
 0x356   :  { %v1449_v6 = vmul.f32 0.70710677, %v1340_v9  ;;  %v1344_v56 = vadd.f32 %v1343_v15, %v3310_v57  ;;  %v1417_v7 = vmul.f32 0.5, %v1340_v9 }
 0x357   :  { %2270 = verf.f32 %v1448_v42  ;;  %v1450_v44 = vmul.f32 0.70710677, %v1342_v11  ;;  %v1418_v50 = vmul.f32 0.5, %v1342_v11 }
 0x358   :  { %2272 = verf.f32 %v1449_v6  ;;  %v1451_v28 = vmul.f32 0.70710677, %v1344_v56  ;;  %v1419_v14 = vmul.f32 0.5, %v1344_v56 }
 0x359   :  { %2274 = verf.f32 %v1450_v44 }
 0x35a   :  { %2276 = verf.f32 %v1451_v28  ;;  %v1347_v48 = vpop.f32.mrb[20].mxu0 }
 0x35b   :  { %v1348_v63 = vadd.f32 %v1347_v48, %v3315_v29  ;;  %v1349_v34 = vpop.f32.mrb[21].mxu0 }
 0x35c   :  { %v3321_v58 = vadd.f32 %v1349_v34, %v3315_v29  ;;  %v1351_v35 = vpop.f32.mrb[22].mxu0 }
 0x35d   :  { %v1452_v26 = vmul.f32 0.70710677, %v1348_v63  ;;  %v1352_v21 = vadd.f32 %v1351_v35, %v3318_v59  ;;  %v1353_v13 = vpop.f32.mrb[23].mxu0 }
 0x35e   :  { %v1453_v19 = vmul.f32 0.70710677, %v3321_v58  ;;  %v1354_v16 = vadd.f32 %v1353_v13, %v3318_v59 }
 0x35f   :  { %2278 = verf.f32 %v1452_v26  ;;  %v1454_v37 = vmul.f32 0.70710677, %v1352_v21 }
 0x360   :  { %2280 = verf.f32 %v1453_v19  ;;  %v1455_v46 = vmul.f32 0.70710677, %v1354_v16 }
 0x361   :  { %v2271_v38 = vpop.eup %2270  ;;  %2282 = verf.f32 %v1454_v37 }
 0x362   :  { %v2273_v27 = vpop.eup %2272  ;;  %v1512_v12 = vadd.f32 1.0, %v2271_v38  ;;  %2284 = verf.f32 %v1455_v46  ;;  %v1357_v36 = vpop.f32.mrb[24].mxu0 }
 0x363   :  { %v2275_v0 = vpop.eup %2274  ;;  %v1513_v30 = vadd.f32 1.0, %v2273_v27  ;;  %v3329_v24 = vadd.f32 %v1357_v36, %v3326_v22  ;;  %v1359_v39 = vpop.f32.mrb[25].mxu0 }
 0x364   :  { %v2277_v31 = vpop.eup %2276  ;;  %v1514_v47 = vadd.f32 1.0, %v2275_v0  ;;  %v3332_v52 = vadd.f32 %v1359_v39, %v3326_v22  ;;  %v1361_v43 = vpop.f32.mrb[26].mxu0  ;;  %v1544_v44 = vmul.f32 %v1512_v12, %v1416_v40  ;;  %v1422_v40 = vmul.f32 0.5, %v1352_v21 }
 0x365   :  { %v1515_v42 = vadd.f32 1.0, %v2277_v31  ;;  %v1456_v15 = vmul.f32 0.70710677, %v3329_v24  ;;  %v1363_v6 = vpop.f32.mrb[27].mxu0  ;;  %v3339_v61 = vadd.f32 %v1361_v43, %v3334_v10  ;;  %v1545_v11 = vmul.f32 %v1513_v30, %v1417_v7  ;;  %v3346_v46 = vpop.permute.xlu0 %1190 }
 0x366   :  { %v1546_v28 = vmul.f32 %v1514_v47, %v1418_v50  ;;  %v1457_v48 = vmul.f32 0.70710677, %v3332_v52  ;;  %v3342_v35 = vadd.f32 %v1363_v6, %v3334_v10  ;;  %v1420_v31 = vmul.f32 0.5, %v1348_v63  ;;  %v3354_v7 = vpop.permute.xlu1 %1195 }
 0x367   :  { %v1547_v34 = vmul.f32 %v1515_v42, %v1419_v14  ;;  %2286 = verf.f32 %v1456_v15  ;;  %v1458_v9 = vmul.f32 0.70710677, %v3339_v61  ;;  %v1421_v14 = vmul.f32 0.5, %v3321_v58 }
 0x368   :  { %v1576_v26 = vpack.c.bf16 %v1546_v28, %v1544_v44  ;;  %2288 = verf.f32 %v1457_v48  ;;  %v1459_v13 = vmul.f32 0.70710677, %v3342_v35  ;;  %v1423_v42 = vmul.f32 0.5, %v1354_v16 }
 0x369   :  { %v2279_v56 = vpop.eup %2278  ;;  %v1577_v19 = vpack.c.bf16 %v1547_v34, %v1545_v11  ;;  %2290 = verf.f32 %v1458_v9 }
 0x36a   :  { %v2281_v37 = vpop.eup %2280  ;;  %v1516_v38 = vadd.f32 1.0, %v2279_v56  ;;  %v1367_v27 = vpop.f32.mrb[28].mxu0  ;;  %2292 = verf.f32 %v1459_v13 }
 0x36b   :  { %v2283_v12 = vpop.eup %2282  ;;  %v1517_v36 = vadd.f32 1.0, %v2281_v37  ;;  %v3349_v0 = vadd.f32 %v1367_v27, %v3346_v46  ;;  %v1369_v30 = vpop.f32.mrb[29].mxu0  ;;  %1624 = vmatprep.subr.bf16.mxu1 %v1577_v19 }
 0x36c   :  { %v2285_v39 = vpop.eup %2284  ;;  %v1518_v50 = vadd.f32 1.0, %v2283_v12  ;;  %v3352_v47 = vadd.f32 %v1369_v30, %v3346_v46  ;;  %v1371_v43 = vpop.f32.mrb[30].mxu0  ;;  %1625 = vmatpush1.bf16.msra.mxu1 %v1576_v26  ;;  %v1548_v28 = vmul.f32 %v1516_v38, %v1420_v31 }
 0x36d   :  { %v1519_v15 = vadd.f32 1.0, %v2285_v39  ;;  %v1460_v6 = vmul.f32 0.70710677, %v3349_v0  ;;  %v1373_v44 = vpop.f32.mrb[31].mxu0  ;;  %v3360_v21 = vadd.f32 %v1371_v43, %v3354_v7  ;;  %v1549_v11 = vmul.f32 %v1517_v36, %v1421_v14  ;;  %v3367_v37 = vpop.permute.xlu0 %1200 }
 0x36e   :  { %v1550_v48 = vmul.f32 %v1518_v50, %v1422_v40  ;;  %v1461_v63 = vmul.f32 0.70710677, %v3352_v47  ;;  %v3363_v26 = vadd.f32 %v1373_v44, %v3354_v7  ;;  %v1424_v39 = vmul.f32 0.5, %v3329_v24  ;;  %v3376_v14 = vpop.permute.xlu1 %1205 }
 0x36f   :  { %v1551_v34 = vmul.f32 %v1519_v15, %v1423_v42  ;;  %2294 = verf.f32 %v1460_v6  ;;  %v1462_v58 = vmul.f32 0.70710677, %v3360_v21  ;;  %v1425_v42 = vmul.f32 0.5, %v3332_v52 }
 0x370   :  { %v1578_v9 = vpack.c.bf16 %v1550_v48, %v1548_v28  ;;  %2296 = verf.f32 %v1461_v63  ;;  %v1463_v56 = vmul.f32 0.70710677, %v3363_v26  ;;  %v1426_v15 = vmul.f32 0.5, %v3339_v61 }
 0x371   :  { %v2287_v16 = vpop.eup %2286  ;;  %v1579_v13 = vpack.c.bf16 %v1551_v34, %v1549_v11  ;;  %2298 = verf.f32 %v1462_v58  ;;  %v1427_v48 = vmul.f32 0.5, %v3342_v35 }
 0x372   :  { %v2289_v19 = vpop.eup %2288  ;;  %v1377_v38 = vpop.f32.mrb[32].mxu0  ;;  %v1520_v27 = vadd.f32 1.0, %v2287_v16  ;;  %2300 = verf.f32 %v1463_v56 }
 0x373   :  { %v3370_v12 = vadd.f32 %v1377_v38, %v3367_v37  ;;  %v1379_v36 = vpop.f32.mrb[33].mxu0  ;;  %1626 = vmatprep.subr.bf16.mxu1 %v1579_v13  ;;  %v2291_v30 = vpop.eup %2290  ;;  %v1521_v31 = vadd.f32 1.0, %v2289_v19 }
 0x374   :  { %v3374_v40 = vadd.f32 %v1379_v36, %v3367_v37  ;;  %v1381_v50 = vpop.f32.mrb[34].mxu0  ;;  %1627 = vmatpush1.bf16.msra.mxu1 %v1578_v9  ;;  %v2293_v43 = vpop.eup %2292  ;;  %v1522_v6 = vadd.f32 1.0, %v2291_v30  ;;  %v1552_v34 = vmul.f32 %v1520_v27, %v1424_v39 }
 0x375   :  { %v1464_v44 = vmul.f32 0.70710677, %v3370_v12  ;;  %v1383_v28 = vpop.f32.mrb[35].mxu0  ;;  %v1523_v24 = vadd.f32 1.0, %v2293_v43  ;;  %v3384_v11 = vadd.f32 %v1381_v50, %v3376_v14  ;;  %v1553_v52 = vmul.f32 %v1521_v31, %v1425_v42  ;;  %v3391_v38 = vpop.permute.xlu0 %1210 }
 0x376   :  { %v1465_v63 = vmul.f32 0.70710677, %v3374_v40  ;;  %v1554_v9 = vmul.f32 %v1522_v6, %v1426_v15  ;;  %v3387_v58 = vadd.f32 %v1383_v28, %v3376_v14  ;;  %v1428_v43 = vmul.f32 0.5, %v3349_v0  ;;  %v3400_v28 = vpop.permute.xlu1 %1215 }
 0x377   :  { %2302 = verf.f32 %v1464_v44  ;;  %v1555_v61 = vmul.f32 %v1523_v24, %v1427_v48  ;;  %v1466_v16 = vmul.f32 0.70710677, %v3384_v11  ;;  %v1429_v48 = vmul.f32 0.5, %v3352_v47 }
 0x378   :  { %2304 = verf.f32 %v1465_v63  ;;  %v1580_v13 = vpack.c.bf16 %v1554_v9, %v1552_v34  ;;  %v1467_v35 = vmul.f32 0.70710677, %v3387_v58  ;;  %v1430_v24 = vmul.f32 0.5, %v3360_v21 }
 0x379   :  { %v2295_v56 = vpop.eup %2294  ;;  %2306 = verf.f32 %v1466_v16  ;;  %v1581_v27 = vpack.c.bf16 %v1555_v61, %v1553_v52  ;;  %v1431_v0 = vmul.f32 0.5, %v3363_v26 }
 0x37a   :  { %v2297_v19 = vpop.eup %2296  ;;  %v1387_v36 = vpop.f32.mrb[36].mxu0  ;;  %v1524_v30 = vadd.f32 1.0, %v2295_v56  ;;  %2308 = verf.f32 %v1467_v35 }
 0x37b   :  { %v3394_v39 = vadd.f32 %v1387_v36, %v3391_v38  ;;  %v1389_v31 = vpop.f32.mrb[37].mxu0  ;;  %v2299_v50 = vpop.eup %2298  ;;  %v1525_v42 = vadd.f32 1.0, %v2297_v19  ;;  %1628 = vmatprep.subr.bf16.mxu1 %v1581_v27 }
 0x37c   :  { %v3398_v15 = vadd.f32 %v1389_v31, %v3391_v38  ;;  %v1391_v6 = vpop.f32.mrb[38].mxu0  ;;  %v2301_v44 = vpop.eup %2300  ;;  %v1526_v63 = vadd.f32 1.0, %v2299_v50  ;;  %1629 = vmatpush1.bf16.msra.mxu1 %v1580_v13  ;;  %v1556_v56 = vmul.f32 %v1524_v30, %v1428_v43 }
 0x37d   :  { %v1468_v34 = vmul.f32 0.70710677, %v3394_v39  ;;  %v1393_v9 = vpop.f32.mrb[39].mxu0  ;;  %v1527_v52 = vadd.f32 1.0, %v2301_v44  ;;  %v3408_v16 = vadd.f32 %v1391_v6, %v3400_v28  ;;  %v1557_v21 = vmul.f32 %v1525_v42, %v1429_v48  ;;  %v3415_v50 = vpop.permute.xlu0 %1220 }
 0x37e   :  { %v1469_v61 = vmul.f32 0.70710677, %v3398_v15  ;;  %v1558_v35 = vmul.f32 %v1526_v63, %v1430_v24  ;;  %v3411_v47 = vadd.f32 %v1393_v9, %v3400_v28  ;;  %v1432_v24 = vmul.f32 0.5, %v3370_v12 }
 0x37f   :  { %2310 = verf.f32 %v1468_v34  ;;  %v1559_v19 = vmul.f32 %v1527_v52, %v1431_v0  ;;  %v1470_v13 = vmul.f32 0.70710677, %v3408_v16  ;;  %v3424_v52 = vpop.permute.xlu1 %1225  ;;  %v1435_v12 = vmul.f32 0.5, %v3387_v58 }
 0x380   :  { %2312 = verf.f32 %v1469_v61  ;;  %v1582_v27 = vpack.c.bf16 %v1558_v35, %v1556_v56  ;;  %v1471_v26 = vmul.f32 0.70710677, %v3411_v47  ;;  %v1433_v61 = vmul.f32 0.5, %v3374_v40 }
 0x381   :  { %v2303_v36 = vpop.eup %2302  ;;  %2314 = verf.f32 %v1470_v13  ;;  %v1583_v30 = vpack.c.bf16 %v1559_v19, %v1557_v21  ;;  %v1434_v56 = vmul.f32 0.5, %v3384_v11  ;;  %v3433_v2 = vpop.permute.xlu0 %1230 }
 0x382   :  { %v2305_v31 = vpop.eup %2304  ;;  %v1397_v6 = vpop.f32.mrb[40].mxu0  ;;  %v1528_v43 = vadd.f32 1.0, %v2303_v36  ;;  %2316 = verf.f32 %v1471_v26  ;;  %3697 = vst [vmem:[#allocation5_spill] sm:$0xff] %v3433_v2 }
 0x383   :  { %v3418_v44 = vadd.f32 %v1397_v6, %v3415_v50  ;;  %v1399_v42 = vpop.f32.mrb[41].mxu0  ;;  %v2307_v48 = vpop.eup %2306  ;;  %v1529_v63 = vadd.f32 1.0, %v2305_v31  ;;  %1630 = vmatprep.subr.bf16.mxu1 %v1583_v30 }
 0x384   :  { %v3422_v34 = vadd.f32 %v1399_v42, %v3415_v50  ;;  %v1401_v9 = vpop.f32.mrb[42].mxu0  ;;  %v2309_v0 = vpop.eup %2308  ;;  %v1530_v35 = vadd.f32 1.0, %v2307_v48  ;;  %1631 = vmatpush1.bf16.msra.mxu1 %v1582_v27  ;;  %v1560_v31 = vmul.f32 %v1528_v43, %v1432_v24 }
 0x385   :  { %v1472_v21 = vmul.f32 0.70710677, %v3418_v44  ;;  %v1403_v19 = vpop.f32.mrb[43].mxu0  ;;  %v1531_v13 = vadd.f32 1.0, %v2309_v0  ;;  %v1402_v26 = vadd.f32 %v1401_v9, %v3424_v52  ;;  %v1561_v40 = vmul.f32 %v1529_v63, %v1433_v61 }
 0x386   :  { %v1473_v36 = vmul.f32 0.70710677, %v3422_v34  ;;  %v1562_v6 = vmul.f32 %v1530_v35, %v1434_v56  ;;  %v1404_v30 = vadd.f32 %v1403_v19, %v3424_v52  ;;  %v1436_v63 = vmul.f32 0.5, %v3394_v39  ;;  %v3438_v19 = vpop.permute.xlu1 %1235 }
 0x387   :  { %2318 = verf.f32 %v1472_v21  ;;  %v1563_v42 = vmul.f32 %v1531_v13, %v1435_v12  ;;  %v1474_v11 = vmul.f32 0.70710677, %v1402_v26  ;;  %v1437_v12 = vmul.f32 0.5, %v3398_v15 }
 0x388   :  { %2320 = verf.f32 %v1473_v36  ;;  %v1584_v54 = vpack.c.bf16 %v1562_v6, %v1560_v31  ;;  %v1475_v27 = vmul.f32 0.70710677, %v1404_v30  ;;  %v1438_v13 = vmul.f32 0.5, %v3408_v16 }
 0x389   :  { %v2311_v48 = vpop.eup %2310  ;;  %2322 = verf.f32 %v1474_v11  ;;  %v1585_v0 = vpack.c.bf16 %v1563_v42, %v1561_v40  ;;  %v1439_v40 = vmul.f32 0.5, %v3411_v47 }
 0x38a   :  { %v2313_v41 = vpop.eup %2312  ;;  %v1407_v58 = vpop.f32.mrb[44].mxu0  ;;  %v1532_v53 = vadd.f32 1.0, %v2311_v48  ;;  %2324 = verf.f32 %v1475_v27 }
 0x38b   :  { %v1408_v43 = vadd.f32 %v1407_v58, %v3433_v2  ;;  %v1409_v24 = vpop.f32.mrb[45].mxu0  ;;  %v2315_v9 = vpop.eup %2314  ;;  %v1533_v61 = vadd.f32 1.0, %v2313_v41  ;;  %1632 = vmatprep.subr.bf16.mxu1 %v1585_v0 }
 0x38c   :  { %v1410_v56 = vadd.f32 %v1409_v24, %v3433_v2  ;;  %v1411_v35 = vpop.f32.mrb[46].mxu0  ;;  %v2317_v21 = vpop.eup %2316  ;;  %v1534_v36 = vadd.f32 1.0, %v2315_v9  ;;  %1633 = vmatpush1.bf16.msra.mxu1 %v1584_v54  ;;  %v1564_v11 = vmul.f32 %v1532_v53, %v1436_v63  ;;  %v1440_v63 = vmul.f32 0.5, %v3418_v44 }
 0x38d   :  { %v1476_v31 = vmul.f32 0.70710677, %v1408_v43  ;;  %v1413_v6 = vpop.f32.mrb[47].mxu0  ;;  %v1535_v42 = vadd.f32 1.0, %v2317_v21  ;;  %v1412_v41 = vadd.f32 %v1411_v35, %v3438_v19  ;;  %v1565_v58 = vmul.f32 %v1533_v61, %v1437_v12 }
 0x38e   :  { %v1477_v39 = vmul.f32 0.70710677, %v1410_v56  ;;  %v1566_v48 = vmul.f32 %v1534_v36, %v1438_v13  ;;  %v1414_v27 = vadd.f32 %v1413_v6, %v3438_v19  ;;  %v1442_v35 = vmul.f32 0.5, %v1402_v26 }
 0x38f   :  { %2326 = verf.f32 %v1476_v31  ;;  %v1567_v0 = vmul.f32 %v1535_v42, %v1439_v40  ;;  %v1478_v15 = vmul.f32 0.70710677, %v1412_v41  ;;  %v1441_v61 = vmul.f32 0.5, %v3422_v34 }
 0x390   :  { %2328 = verf.f32 %v1477_v39  ;;  %v1586_v24 = vpack.c.bf16 %v1566_v48, %v1564_v11  ;;  %v1479_v9 = vmul.f32 0.70710677, %v1414_v27  ;;  %v1443_v12 = vmul.f32 0.5, %v1404_v30 }
 0x391   :  { %v2319_v16 = vpop.eup %2318  ;;  %2330 = verf.f32 %v1478_v15  ;;  %v1587_v4 = vpack.c.bf16 %v1567_v0, %v1565_v58  ;;  %v1444_v26 = vmul.f32 0.5, %v1408_v43  ;;  %v1445_v34 = vmul.f32 0.5, %v1410_v56 }
 0x392   :  { %v2321_v54 = vpop.eup %2320  ;;  %v1536_v47 = vadd.f32 1.0, %v2319_v16  ;;  %2332 = verf.f32 %v1479_v9  ;;  %v1446_v16 = vmul.f32 0.5, %v1412_v41  ;;  %v1447_v30 = vmul.f32 0.5, %v1414_v27 }
 0x393   :  { %v2323_v21 = vpop.eup %2322  ;;  %v1537_v2 = vadd.f32 1.0, %v2321_v54  ;;  %1634 = vmatprep.subr.bf16.mxu1 %v1587_v4  ;;  %v3698_v43 = vpack.c.bf16 %v3245_v25, %v3242_v55  ;;  %v3699_v56 = vpack.c.bf16 %v3221_v23, %v3218_v45  ;;  %v3700_v41 = vmov 0  }
 0x394   :  { %v2325_v53 = vpop.eup %2324  ;;  %v1538_v13 = vadd.f32 1.0, %v2323_v21  ;;  %1635 = vmatpush1.bf16.msra.mxu1 %v1586_v24  ;;  %v1568_v31 = vmul.f32 %v1536_v47, %v1440_v63  ;;  %v3701_v27 = vpack.c.bf16 %v3250_v18, %v3247_v62  ;;  %v3702_v55 = vpack.c.bf16 %v3226_v17, %v3223_v32  ;;  %v3499_v17 = vpop.permute.xlu1 %1599  ;;  %v2398_v62 = vld [vmem:[%s3679_s0] sm:$0xff] }
 0x395   :  { %v1539_v36 = vadd.f32 1.0, %v2325_v53  ;;  %v1569_v40 = vmul.f32 %v1537_v2, %v1441_v61 }
 0x396   :  { %v1570_v6 = vmul.f32 %v1538_v13, %v1442_v35  ;;  %v3450_v35 = vld [vmem:[%s3690_s11] sm:$0xff]   ;;  %v3466_v13 = vld [vmem:[%s3690_s11 + $0x8] sm:$0xff]  }
 0x397   :  { %v1571_v42 = vmul.f32 %v1539_v36, %v1443_v12  ;;  %v2401_v12 = vld [vmem:[%s3679_s0 + $0x18] sm:$0xff] }
 0x398   :  { %v1588_v11 = vpack.c.bf16 %v1570_v6, %v1568_v31 }
 0x399   :  { %v2327_v39 = vpop.eup %2326  ;;  %v1589_v58 = vpack.c.bf16 %v1571_v42, %v1569_v40 }
 0x39a   :  { %v2329_v48 = vpop.eup %2328  ;;  %v1540_v0 = vadd.f32 1.0, %v2327_v39  ;;  %v3521_v39 = vpop.permute.xlu1 %1609 }
 0x39b   :  { %v2331_v4 = vpop.eup %2330  ;;  %v1541_v15 = vadd.f32 1.0, %v2329_v48  ;;  %1636 = vmatprep.subr.bf16.mxu1 %v1589_v58  ;;  %v2402_v58 = vld [vmem:[%s3679_s0 + $0x20] sm:$0xff] }
 0x39c   :  { %v2333_v44 = vpop.eup %2332  ;;  %v1542_v24 = vadd.f32 1.0, %v2331_v4  ;;  %1637 = vmatpush1.bf16.msra.mxu1 %v1588_v11  ;;  %v1572_v54 = vmul.f32 %v1540_v0, %v1444_v26 }
 0x39d   :  { %v1543_v9 = vadd.f32 1.0, %v2333_v44  ;;  %v1573_v2 = vmul.f32 %v1541_v15, %v1445_v34  ;;  %v2403_v44 = vld [vmem:[%s3679_s0 + $0x28] sm:$0xff] }
 0x39e   :  { %v1574_v47 = vmul.f32 %v1542_v24, %v1446_v16  ;;  %v2404_v24 = vld [vmem:[%s3679_s0 + $0x30] sm:$0xff] }
 0x39f   :  { %v1575_v21 = vmul.f32 %v1543_v9, %v1447_v30  ;;  %v2405_v30 = vld [vmem:[%s3679_s0 + $0x38] sm:$0xff] }
 0x3a0   :  { %v1590_v53 = vpack.c.bf16 %v1574_v47, %v1572_v54 }
 0x3a1   :  { %v1591_v63 = vpack.c.bf16 %v1575_v21, %v1573_v2 }
 0x3a3   :  { %1638 = vmatprep.subr.bf16.mxu1 %v1591_v63 }
 0x3a4   :  { %1639 = vmatpush1.bf16.msra.mxu1 %v1590_v53 }
 0x3a5   :  { %1693 = vmatprep.subr.bf16.mxu1 %v3698_v43 }
 0x3a7   :  { %1657 = vmatmul.mubr.bf16.vlgmr.msra.gmra.mrb[16].mxu1 %v3450_v35 }
 0x3a8   :  { %1694 = vmatpush1.bf16.msra.mxu1 %v3699_v56  ;;  %1666 = vmatprep.mubr.bf16.mxu1 %v3700_v41 }
 0x3a9   :  { %1695 = vmatprep.subr.bf16.mxu1 %v3701_v27 }
 0x3ac   :  { %1696 = vmatpush1.bf16.msra.mxu1 %v3702_v55 }
 0x3af   :  { %1667 = vmatmul.mubr.bf16.gmra.mrb[20].mxu1 %v3466_v13 }
 0x3b0   :  { %1725 = vmatprep.mubr.bf16.mxu1 %v3700_v41 }
 0x3b7   :  { %2146 = vmatmul.mubr.msk.bf16.vlgmr.msra.gmra.mrb[24].mxu1 %vm1278_vm1, %v3208_v51  ;;  %v3496_v51 = vpop.permute.xlu0 %1594 }
 0x3b8   :  { %1735 = vmatprep.mubr.bf16.mxu1 %v3700_v41 }
 0x3bb   :  { %v3517_v31 = vpop.permute.xlu0 %1604 }
 0x3bf   :  { %2147 = vmatmul.mubr.msk.bf16.gmra.mrb[28].mxu1 %vm1278_vm1, %v3232_v8 }
 0x3c0   :  { %1745 = vmatprep.mubr.bf16.mxu1 %v3700_v41 }
 0x3c7   :  { %2148 = vmatmul.mubr.msk.bf16.gmra.mrb[32].mxu1 %vm1278_vm1, %v3262_v20 }
 0x3c8   :  { %1755 = vmatprep.mubr.bf16.mxu1 %v3700_v41 }
 0x3cf   :  { %2149 = vmatmul.mubr.msk.bf16.gmra.mrb[36].mxu1 %vm1278_vm1, %v3270_v49 }
 0x3d0   :  { %1765 = vmatprep.mubr.bf16.mxu1 %v3700_v41 }
 0x3d7   :  { %2150 = vmatmul.mubr.msk.bf16.gmra.mrb[40].mxu1 %vm1278_vm1, %v3278_v1  ;;  %v2399_v1 = vld [vmem:[%s3679_s0 + $0x8] sm:$0xff] }
 0x3d8   :  { %1775 = vmatprep.mubr.bf16.mxu1 %v3700_v41 }
 0x3df   :  { %2151 = vmatmul.mubr.msk.bf16.gmra.mrb[44].mxu1 %vm1278_vm1, %v3286_v3 }
 0x3e0   :  { %1785 = vmatprep.mubr.bf16.mxu1 %v3700_v41 }
 0x3e7   :  { %2152 = vmatmul.mubr.msk.bf16.gmra.mrb[48].mxu1 %vm1278_vm1, %v3294_v5 }
 0x3e8   :  { %1795 = vmatprep.mubr.bf16.mxu1 %v3700_v41 }
 0x3ef   :  { %2153 = vmatmul.mubr.msk.bf16.gmra.mrb[52].mxu1 %vm1278_vm1, %v3302_v60  ;;  %v2400_v60 = vld [vmem:[%s3679_s0 + $0x10] sm:$0xff] }
 0x47a   :  { %v1658_v45 = vpop.f32.mrb[16].mxu1 }
 0x47b   :  { %v1659_v23 = vadd.f32 %v1658_v45, %v3496_v51  ;;  %v1660_v32 = vpop.f32.mrb[17].mxu1 }
 0x47c   :  { %v1661_v8 = vadd.f32 %v1660_v32, %v3496_v51  ;;  %v1662_v25 = vpop.f32.mrb[18].mxu1 }
 0x47d   :  { %v1677_v18 = vadd.f32 %v2398_v62, %v1659_v23  ;;  %v1663_v20 = vadd.f32 %v1662_v25, %v3499_v17  ;;  %v1664_v49 = vpop.f32.mrb[19].mxu1 }
 0x47e   :  { %v1678_v3 = vadd.f32 %v2399_v1, %v1661_v8  ;;  %v1665_v5 = vadd.f32 %v1664_v49, %v3499_v17 }
 0x47f   :  { %1685 = vst [vmem:[#allocation2] sm:$0xff] %v1677_v18  ;;  %v1679_v61 = vadd.f32 %v2400_v60, %v1663_v20 }
 0x480   :  { %1686 = vst.msk [vmem:[#allocation2 + $0x8] sm:$0xff] %vm79_vm0, %v1678_v3  ;;  %v1680_v36 = vadd.f32 %v2401_v12, %v1665_v5 }
 0x481   :  { %1687 = vst [vmem:[#allocation2 + $0x10] sm:$0xff] %v1679_v61 }
 0x482   :  { %1688 = vst.msk [vmem:[#allocation2 + $0x18] sm:$0xff] %vm79_vm0, %v1680_v36  ;;  %v1668_v6 = vpop.f32.mrb[20].mxu1 }
 0x483   :  { %v1669_v40 = vadd.f32 %v1668_v6, %v3517_v31  ;;  %v1670_v42 = vpop.f32.mrb[21].mxu1 }
 0x484   :  { %v1671_v11 = vadd.f32 %v1670_v42, %v3517_v31  ;;  %v1672_v48 = vpop.f32.mrb[22].mxu1 }
 0x485   :  { %v1681_v0 = vadd.f32 %v2402_v58, %v1669_v40  ;;  %v1673_v4 = vadd.f32 %v1672_v48, %v3521_v39  ;;  %v1674_v15 = vpop.f32.mrb[23].mxu1 }
 0x486   :  { %v1682_v26 = vadd.f32 %v2403_v44, %v1671_v11  ;;  %v1675_v16 = vadd.f32 %v1674_v15, %v3521_v39 }
 0x487   :  { %1689 = vst [vmem:[#allocation2 + $0x20] sm:$0xff] %v1681_v0  ;;  %v1683_v34 = vadd.f32 %v2404_v24, %v1673_v4 }
 0x488   :  { %1690 = vst.msk [vmem:[#allocation2 + $0x28] sm:$0xff] %vm79_vm0, %v1682_v26  ;;  %v1684_v9 = vadd.f32 %v2405_v30, %v1675_v16 }
 0x489   :  { %1691 = vst [vmem:[#allocation2 + $0x30] sm:$0xff] %v1683_v34 }
 0x48a   :  { %1692 = vst.msk [vmem:[#allocation2 + $0x38] sm:$0xff] %vm79_vm0, %v1684_v9  ;;  %v1727_v54 = vpop.f32.mrb[24].mxu1 }
 0x48b   :  { %v1728_v47 = vadd.f32 %v1727_v54, %v3307_v33  ;;  %v1729_v2 = vpop.f32.mrb[25].mxu1 }
 0x48c   :  { %v1730_v21 = vadd.f32 %v1729_v2, %v3307_v33  ;;  %v1731_v53 = vpop.f32.mrb[26].mxu1 }
 0x48d   :  { %v1838_v63 = vmul.f32 0.70710677, %v1728_v47  ;;  %v1732_v43 = vadd.f32 %v1731_v53, %v3310_v57  ;;  %v1733_v56 = vpop.f32.mrb[27].mxu1  ;;  %v1806_v48 = vmul.f32 0.5, %v1728_v47 }
 0x48e   :  { %v1839_v27 = vmul.f32 0.70710677, %v1730_v21  ;;  %v1734_v55 = vadd.f32 %v1733_v56, %v3310_v57  ;;  %v1807_v15 = vmul.f32 0.5, %v1730_v21 }
 0x48f   :  { %2334 = verf.f32 %v1838_v63  ;;  %v1840_v45 = vmul.f32 0.70710677, %v1732_v43  ;;  %v1808_v58 = vmul.f32 0.5, %v1732_v43 }
 0x490   :  { %2336 = verf.f32 %v1839_v27  ;;  %v1841_v23 = vmul.f32 0.70710677, %v1734_v55  ;;  %v1809_v44 = vmul.f32 0.5, %v1734_v55 }
 0x491   :  { %2338 = verf.f32 %v1840_v45 }
 0x492   :  { %2340 = verf.f32 %v1841_v23  ;;  %v1737_v32 = vpop.f32.mrb[28].mxu1 }
 0x493   :  { %v1738_v8 = vadd.f32 %v1737_v32, %v3315_v29  ;;  %v1739_v25 = vpop.f32.mrb[29].mxu1 }
 0x494   :  { %v1740_v33 = vadd.f32 %v1739_v25, %v3315_v29  ;;  %v1741_v62 = vpop.f32.mrb[30].mxu1 }
 0x495   :  { %v1842_v18 = vmul.f32 0.70710677, %v1738_v8  ;;  %v1742_v20 = vadd.f32 %v1741_v62, %v3318_v59  ;;  %v1743_v49 = vpop.f32.mrb[31].mxu1 }
 0x496   :  { %v1843_v1 = vmul.f32 0.70710677, %v1740_v33  ;;  %v1744_v57 = vadd.f32 %v1743_v49, %v3318_v59 }
 0x497   :  { %2342 = verf.f32 %v1842_v18  ;;  %v1844_v3 = vmul.f32 0.70710677, %v1742_v20  ;;  %v1812_v49 = vmul.f32 0.5, %v1742_v20 }
 0x498   :  { %2344 = verf.f32 %v1843_v1  ;;  %v1845_v5 = vmul.f32 0.70710677, %v1744_v57 }
 0x499   :  { %v2335_v60 = vpop.eup %2334  ;;  %2346 = verf.f32 %v1844_v3 }
 0x49a   :  { %v2337_v61 = vpop.eup %2336  ;;  %v1902_v12 = vadd.f32 1.0, %v2335_v60  ;;  %2348 = verf.f32 %v1845_v5  ;;  %v1747_v36 = vpop.f32.mrb[32].mxu1  ;;  %v1811_v60 = vmul.f32 0.5, %v1740_v33 }
 0x49b   :  { %v2339_v6 = vpop.eup %2338  ;;  %v1903_v29 = vadd.f32 1.0, %v2337_v61  ;;  %v3549_v40 = vadd.f32 %v1747_v36, %v3326_v22  ;;  %v1749_v42 = vpop.f32.mrb[33].mxu1  ;;  %v1813_v61 = vmul.f32 0.5, %v1744_v57 }
 0x49c   :  { %v2341_v11 = vpop.eup %2340  ;;  %v1904_v59 = vadd.f32 1.0, %v2339_v6  ;;  %v3552_v0 = vadd.f32 %v1749_v42, %v3326_v22  ;;  %v1751_v4 = vpop.f32.mrb[34].mxu1  ;;  %v1934_v34 = vmul.f32 %v1902_v12, %v1806_v48 }
 0x49d   :  { %v1905_v26 = vadd.f32 1.0, %v2341_v11  ;;  %v1846_v16 = vmul.f32 0.70710677, %v3549_v40  ;;  %v1753_v24 = vpop.f32.mrb[35].mxu1  ;;  %v1752_v54 = vadd.f32 %v1751_v4, %v3334_v10  ;;  %v1935_v2 = vmul.f32 %v1903_v29, %v1807_v15 }
 0x49e   :  { %v1936_v30 = vmul.f32 %v1904_v59, %v1808_v58  ;;  %v1847_v9 = vmul.f32 0.70710677, %v3552_v0  ;;  %v1754_v53 = vadd.f32 %v1753_v24, %v3334_v10  ;;  %v1810_v10 = vmul.f32 0.5, %v1738_v8 }
 0x49f   :  { %v1937_v47 = vmul.f32 %v1905_v26, %v1809_v44  ;;  %2350 = verf.f32 %v1846_v16  ;;  %v1848_v63 = vmul.f32 0.70710677, %v1752_v54 }
 0x4a0   :  { %v1966_v22 = vpack.c.bf16 %v1936_v30, %v1934_v34  ;;  %2352 = verf.f32 %v1847_v9  ;;  %v1849_v43 = vmul.f32 0.70710677, %v1754_v53  ;;  %v1814_v30 = vmul.f32 0.5, %v3549_v40 }
 0x4a1   :  { %v2343_v21 = vpop.eup %2342  ;;  %v1967_v56 = vpack.c.bf16 %v1937_v47, %v1935_v2  ;;  %2354 = verf.f32 %v1848_v63  ;;  %v1816_v63 = vmul.f32 0.5, %v1752_v54 }
 0x4a2   :  { %v2345_v27 = vpop.eup %2344  ;;  %v1906_v55 = vadd.f32 1.0, %v2343_v21  ;;  %v1757_v45 = vpop.f32.mrb[36].mxu1  ;;  %2356 = verf.f32 %v1849_v43 }
 0x4a3   :  { %v2347_v23 = vpop.eup %2346  ;;  %v1907_v32 = vadd.f32 1.0, %v2345_v27  ;;  %v3559_v25 = vadd.f32 %v1757_v45, %v3346_v46  ;;  %v1759_v62 = vpop.f32.mrb[37].mxu1  ;;  %1982 = vmatprep.subr.bf16.mxu0 %v1967_v56  ;;  %v1817_v27 = vmul.f32 0.5, %v1754_v53 }
 0x4a4   :  { %v2349_v18 = vpop.eup %2348  ;;  %v1908_v1 = vadd.f32 1.0, %v2347_v23  ;;  %v3562_v3 = vadd.f32 %v1759_v62, %v3346_v46  ;;  %v1761_v5 = vpop.f32.mrb[38].mxu1  ;;  %1983 = vmatpush1.bf16.msra.mxu0 %v1966_v22  ;;  %v1938_v29 = vmul.f32 %v1906_v55, %v1810_v10  ;;  %v1815_v22 = vmul.f32 0.5, %v3552_v0 }
 0x4a5   :  { %v1909_v12 = vadd.f32 1.0, %v2349_v18  ;;  %v1850_v36 = vmul.f32 0.70710677, %v3559_v25  ;;  %v1763_v6 = vpop.f32.mrb[39].mxu1  ;;  %v1762_v48 = vadd.f32 %v1761_v5, %v3354_v7  ;;  %v1939_v8 = vmul.f32 %v1907_v32, %v1811_v60 }
 0x4a6   :  { %v1940_v42 = vmul.f32 %v1908_v1, %v1812_v49  ;;  %v1851_v11 = vmul.f32 0.70710677, %v3562_v3  ;;  %v1764_v46 = vadd.f32 %v1763_v6, %v3354_v7 }
 0x4a7   :  { %v1941_v20 = vmul.f32 %v1909_v12, %v1813_v61  ;;  %2358 = verf.f32 %v1850_v36  ;;  %v1852_v59 = vmul.f32 0.70710677, %v1762_v48  ;;  %v1818_v36 = vmul.f32 0.5, %v3559_v25 }
 0x4a8   :  { %v1968_v58 = vpack.c.bf16 %v1940_v42, %v1938_v29  ;;  %2360 = verf.f32 %v1851_v11  ;;  %v1853_v57 = vmul.f32 0.70710677, %v1764_v46 }
 0x4a9   :  { %v2351_v33 = vpop.eup %2350  ;;  %v1969_v4 = vpack.c.bf16 %v1941_v20, %v1939_v8  ;;  %2362 = verf.f32 %v1852_v59  ;;  %v1819_v8 = vmul.f32 0.5, %v3562_v3  ;;  %v1820_v20 = vmul.f32 0.5, %v1762_v48 }
 0x4aa   :  { %v2353_v15 = vpop.eup %2352  ;;  %v1767_v44 = vpop.f32.mrb[40].mxu1  ;;  %v1910_v26 = vadd.f32 1.0, %v2351_v33  ;;  %2364 = verf.f32 %v1853_v57  ;;  %v1821_v57 = vmul.f32 0.5, %v1764_v46 }
 0x4ab   :  { %v3569_v16 = vadd.f32 %v1767_v44, %v3367_v37  ;;  %v1769_v24 = vpop.f32.mrb[41].mxu1  ;;  %1984 = vmatprep.subr.bf16.mxu0 %v1969_v4  ;;  %v2355_v34 = vpop.eup %2354  ;;  %v1911_v7 = vadd.f32 1.0, %v2353_v15 }
 0x4ac   :  { %v3573_v9 = vadd.f32 %v1769_v24, %v3367_v37  ;;  %v1771_v2 = vpop.f32.mrb[42].mxu1  ;;  %1985 = vmatpush1.bf16.msra.mxu0 %v1968_v58  ;;  %v2357_v47 = vpop.eup %2356  ;;  %v1912_v21 = vadd.f32 1.0, %v2355_v34  ;;  %v1942_v23 = vmul.f32 %v1910_v26, %v1814_v30 }
 0x4ad   :  { %v1854_v43 = vmul.f32 0.70710677, %v3569_v16  ;;  %v1773_v56 = vpop.f32.mrb[43].mxu1  ;;  %v1913_v55 = vadd.f32 1.0, %v2357_v47  ;;  %v3579_v40 = vadd.f32 %v1771_v2, %v3376_v14  ;;  %v1943_v62 = vmul.f32 %v1911_v7, %v1815_v22 }
 0x4ae   :  { %v1855_v45 = vmul.f32 0.70710677, %v3573_v9  ;;  %v1944_v37 = vmul.f32 %v1912_v21, %v1816_v63  ;;  %v3582_v32 = vadd.f32 %v1773_v56, %v3376_v14 }
 0x4af   :  { %2366 = verf.f32 %v1854_v43  ;;  %v1945_v0 = vmul.f32 %v1913_v55, %v1817_v27  ;;  %v1856_v54 = vmul.f32 0.70710677, %v3579_v40  ;;  %v1822_v43 = vmul.f32 0.5, %v3569_v16 }
 0x4b0   :  { %2368 = verf.f32 %v1855_v45  ;;  %v1970_v10 = vpack.c.bf16 %v1944_v37, %v1942_v23  ;;  %v1857_v53 = vmul.f32 0.70710677, %v3582_v32  ;;  %v1823_v23 = vmul.f32 0.5, %v3573_v9 }
 0x4b1   :  { %v2359_v18 = vpop.eup %2358  ;;  %2370 = verf.f32 %v1856_v54  ;;  %v1971_v5 = vpack.c.bf16 %v1945_v0, %v1943_v62  ;;  %v1824_v37 = vmul.f32 0.5, %v3579_v40 }
 0x4b2   :  { %v2361_v49 = vpop.eup %2360  ;;  %v1777_v1 = vpop.f32.mrb[44].mxu1  ;;  %v1914_v60 = vadd.f32 1.0, %v2359_v18  ;;  %2372 = verf.f32 %v1857_v53  ;;  %v1825_v18 = vmul.f32 0.5, %v3582_v32 }
 0x4b3   :  { %v3587_v61 = vadd.f32 %v1777_v1, %v3391_v38  ;;  %v1779_v14 = vpop.f32.mrb[45].mxu1  ;;  %v2363_v12 = vpop.eup %2362  ;;  %v1915_v6 = vadd.f32 1.0, %v2361_v49  ;;  %1986 = vmatprep.subr.bf16.mxu0 %v1971_v5 }
 0x4b4   :  { %v3591_v29 = vadd.f32 %v1779_v14, %v3391_v38  ;;  %v1781_v42 = vpop.f32.mrb[46].mxu1  ;;  %v2365_v11 = vpop.eup %2364  ;;  %v1916_v58 = vadd.f32 1.0, %v2363_v12  ;;  %1987 = vmatpush1.bf16.msra.mxu0 %v1970_v10  ;;  %v1946_v38 = vmul.f32 %v1914_v60, %v1818_v36 }
 0x4b5   :  { %v1858_v59 = vmul.f32 0.70710677, %v3587_v61  ;;  %v1783_v33 = vpop.f32.mrb[47].mxu1  ;;  %v1917_v4 = vadd.f32 1.0, %v2365_v11  ;;  %v3597_v25 = vadd.f32 %v1781_v42, %v3400_v28  ;;  %v1947_v3 = vmul.f32 %v1915_v6, %v1819_v8  ;;  %v3703_v11 = vld [vmem:[#allocation5_spill] sm:$0xff] }
 0x4b6   :  { %v1859_v15 = vmul.f32 0.70710677, %v3591_v29  ;;  %v1948_v44 = vmul.f32 %v1916_v58, %v1820_v20  ;;  %v3600_v26 = vadd.f32 %v1783_v33, %v3400_v28 }
 0x4b7   :  { %2374 = verf.f32 %v1858_v59  ;;  %v1949_v48 = vmul.f32 %v1917_v4, %v1821_v57  ;;  %v1860_v24 = vmul.f32 0.70710677, %v3597_v25  ;;  %v1826_v59 = vmul.f32 0.5, %v3587_v61 }
 0x4b8   :  { %2376 = verf.f32 %v1859_v15  ;;  %v1972_v30 = vpack.c.bf16 %v1948_v44, %v1946_v38  ;;  %v1861_v46 = vmul.f32 0.70710677, %v3600_v26  ;;  %v1827_v15 = vmul.f32 0.5, %v3591_v29 }
 0x4b9   :  { %v2367_v34 = vpop.eup %2366  ;;  %2378 = verf.f32 %v1860_v24  ;;  %v1973_v47 = vpack.c.bf16 %v1949_v48, %v1947_v3  ;;  %v1828_v38 = vmul.f32 0.5, %v3597_v25  ;;  %v1829_v24 = vmul.f32 0.5, %v3600_v26 }
 0x4ba   :  { %v2369_v7 = vpop.eup %2368  ;;  %v1787_v2 = vpop.f32.mrb[48].mxu1  ;;  %v1918_v22 = vadd.f32 1.0, %v2367_v34  ;;  %2380 = verf.f32 %v1861_v46 }
 0x4bb   :  { %v3605_v63 = vadd.f32 %v1787_v2, %v3415_v50  ;;  %v1789_v28 = vpop.f32.mrb[49].mxu1  ;;  %v2371_v21 = vpop.eup %2370  ;;  %v1919_v56 = vadd.f32 1.0, %v2369_v7  ;;  %1988 = vmatprep.subr.bf16.mxu0 %v1973_v47 }
 0x4bc   :  { %v3609_v27 = vadd.f32 %v1789_v28, %v3415_v50  ;;  %v1791_v55 = vpop.f32.mrb[50].mxu1  ;;  %v2373_v45 = vpop.eup %2372  ;;  %v1920_v62 = vadd.f32 1.0, %v2371_v21  ;;  %1989 = vmatpush1.bf16.msra.mxu0 %v1972_v30  ;;  %v1950_v53 = vmul.f32 %v1918_v22, %v1822_v43 }
 0x4bd   :  { %v1862_v0 = vmul.f32 0.70710677, %v3605_v63  ;;  %v1793_v54 = vpop.f32.mrb[51].mxu1  ;;  %v1921_v10 = vadd.f32 1.0, %v2373_v45  ;;  %v1792_v50 = vadd.f32 %v1791_v55, %v3424_v52  ;;  %v1951_v9 = vmul.f32 %v1919_v56, %v1823_v23 }
 0x4be   :  { %v1863_v16 = vmul.f32 0.70710677, %v3609_v27  ;;  %v1952_v49 = vmul.f32 %v1920_v62, %v1824_v37  ;;  %v1794_v1 = vadd.f32 %v1793_v54, %v3424_v52  ;;  %v1830_v37 = vmul.f32 0.5, %v3605_v63 }
 0x4bf   :  { %2382 = verf.f32 %v1862_v0  ;;  %v1953_v5 = vmul.f32 %v1921_v10, %v1825_v18  ;;  %v1864_v40 = vmul.f32 0.70710677, %v1792_v50  ;;  %v1832_v62 = vmul.f32 0.5, %v1792_v50 }
 0x4c0   :  { %2384 = verf.f32 %v1863_v16  ;;  %v1974_v14 = vpack.c.bf16 %v1952_v49, %v1950_v53  ;;  %v1865_v12 = vmul.f32 0.70710677, %v1794_v1  ;;  %v1831_v0 = vmul.f32 0.5, %v3609_v27 }
 0x4c1   :  { %v2375_v60 = vpop.eup %2374  ;;  %2386 = verf.f32 %v1864_v40  ;;  %v1975_v6 = vpack.c.bf16 %v1953_v5, %v1951_v9  ;;  %v1833_v54 = vmul.f32 0.5, %v1794_v1 }
 0x4c2   :  { %v2377_v36 = vpop.eup %2376  ;;  %v1797_v32 = vpop.f32.mrb[52].mxu1  ;;  %v1922_v42 = vadd.f32 1.0, %v2375_v60  ;;  %2388 = verf.f32 %v1865_v12 }
 0x4c3   :  { %v1798_v8 = vadd.f32 %v1797_v32, %v3703_v11  ;;  %v1799_v20 = vpop.f32.mrb[53].mxu1  ;;  %v2379_v58 = vpop.eup %2378  ;;  %v1923_v52 = vadd.f32 1.0, %v2377_v36  ;;  %1990 = vmatprep.subr.bf16.mxu0 %v1975_v6 }
 0x4c4   :  { %v1800_v33 = vadd.f32 %v1799_v20, %v3703_v11  ;;  %v1801_v57 = vpop.f32.mrb[54].mxu1  ;;  %v2381_v4 = vpop.eup %2380  ;;  %v1924_v44 = vadd.f32 1.0, %v2379_v58  ;;  %1991 = vmatpush1.bf16.msra.mxu0 %v1974_v14  ;;  %v1954_v46 = vmul.f32 %v1922_v42, %v1826_v59 }
 0x4c5   :  { %v1866_v3 = vmul.f32 0.70710677, %v1798_v8  ;;  %v1803_v48 = vpop.f32.mrb[55].mxu1  ;;  %v1925_v34 = vadd.f32 1.0, %v2381_v4  ;;  %v1802_v61 = vadd.f32 %v1801_v57, %v3438_v19  ;;  %v1955_v47 = vmul.f32 %v1923_v52, %v1827_v15 }
 0x4c6   :  { %v1867_v30 = vmul.f32 0.70710677, %v1800_v33  ;;  %v1956_v7 = vmul.f32 %v1924_v44, %v1828_v38  ;;  %v1804_v2 = vadd.f32 %v1803_v48, %v3438_v19  ;;  %v1834_v50 = vmul.f32 0.5, %v1798_v8  ;;  %v2406_v44 = vld [vmem:[%s3679_s0 + $0x40] sm:$0xff] }
 0x4c7   :  { %2390 = verf.f32 %v1866_v3  ;;  %v1957_v22 = vmul.f32 %v1925_v34, %v1829_v24  ;;  %v1868_v29 = vmul.f32 0.70710677, %v1802_v61  ;;  %v1836_v32 = vmul.f32 0.5, %v1802_v61 }
 0x4c8   :  { %2392 = verf.f32 %v1867_v30  ;;  %v1976_v28 = vpack.c.bf16 %v1956_v7, %v1954_v46  ;;  %v1869_v21 = vmul.f32 0.70710677, %v1804_v2  ;;  %v1835_v27 = vmul.f32 0.5, %v1800_v33  ;;  %v2409_v30 = vld [vmem:[%s3679_s0 + $0x58] sm:$0xff] }
 0x4c9   :  { %v2383_v25 = vpop.eup %2382  ;;  %2394 = verf.f32 %v1868_v29  ;;  %v1977_v56 = vpack.c.bf16 %v1957_v22, %v1955_v47  ;;  %v1837_v1 = vmul.f32 0.5, %v1804_v2  ;;  %v2410_v22 = vld [vmem:[%s3679_s0 + $0x60] sm:$0xff] }
 0x4ca   :  { %v2385_v43 = vpop.eup %2384  ;;  %v1926_v26 = vadd.f32 1.0, %v2383_v25  ;;  %2396 = verf.f32 %v1869_v21  ;;  %v2411_v21 = vld [vmem:[%s3679_s0 + $0x68] sm:$0xff] }
 0x4cb   :  { %v2387_v55 = vpop.eup %2386  ;;  %v1927_v45 = vadd.f32 1.0, %v2385_v43  ;;  %1992 = vmatprep.subr.bf16.mxu0 %v1977_v56 }
 0x4cc   :  { %v2389_v23 = vpop.eup %2388  ;;  %v1928_v19 = vadd.f32 1.0, %v2387_v55  ;;  %1993 = vmatpush1.bf16.msra.mxu0 %v1976_v28  ;;  %v1958_v10 = vmul.f32 %v1926_v26, %v1830_v37  ;;  %v2413_v55 = vld [vmem:[%s3679_s0 + $0x78] sm:$0xff] }
 0x4cd   :  { %v1929_v18 = vadd.f32 1.0, %v2389_v23  ;;  %v1959_v53 = vmul.f32 %v1927_v45, %v1831_v0 }
 0x4ce   :  { %v1960_v16 = vmul.f32 %v1928_v19, %v1832_v62 }
 0x4cf   :  { %v1961_v49 = vmul.f32 %v1929_v18, %v1833_v54 }
 0x4d0   :  { %v1978_v5 = vpack.c.bf16 %v1960_v16, %v1958_v10 }
 0x4d1   :  { %v2391_v9 = vpop.eup %2390  ;;  %v1979_v60 = vpack.c.bf16 %v1961_v49, %v1959_v53 }
 0x4d2   :  { %v2393_v40 = vpop.eup %2392  ;;  %v1930_v14 = vadd.f32 1.0, %v2391_v9 }
 0x4d3   :  { %v2395_v12 = vpop.eup %2394  ;;  %v1931_v36 = vadd.f32 1.0, %v2393_v40  ;;  %1994 = vmatprep.subr.bf16.mxu0 %v1979_v60 }
 0x4d4   :  { %v2397_v63 = vpop.eup %2396  ;;  %v1932_v6 = vadd.f32 1.0, %v2395_v12  ;;  %1995 = vmatpush1.bf16.msra.mxu0 %v1978_v5  ;;  %v1962_v11 = vmul.f32 %v1930_v14, %v1834_v50 }
 0x4d5   :  { %v1933_v42 = vadd.f32 1.0, %v2397_v63  ;;  %v1963_v58 = vmul.f32 %v1931_v36, %v1835_v27 }
 0x4d6   :  { %v1964_v20 = vmul.f32 %v1932_v6, %v1836_v32 }
 0x4d7   :  { %v1965_v59 = vmul.f32 %v1933_v42, %v1837_v1 }
 0x4d8   :  { %v1980_v52 = vpack.c.bf16 %v1964_v20, %v1962_v11 }
 0x4d9   :  { %v1981_v57 = vpack.c.bf16 %v1965_v59, %v1963_v58 }
 0x4db   :  { %1996 = vmatprep.subr.bf16.mxu0 %v1981_v57 }
 0x4dc   :  { %1997 = vmatpush1.bf16.msra.mxu0 %v1980_v52 }
 0x4df   :  { %2015 = vmatmul.mubr.bf16.vlgmr.msra.gmra.mrb[48].mxu0 %v3450_v35  ;;  %v2407_v35 = vld [vmem:[%s3679_s0 + $0x48] sm:$0xff] }
 0x4e0   :  { %2024 = vmatprep.mubr.bf16.mxu0 %v3700_v41 }
 0x4e7   :  { %2025 = vmatmul.mubr.bf16.gmra.mrb[52].mxu0 %v3466_v13 }
 0x5b2   :  { %v2016_v8 = vpop.f32.mrb[48].mxu0 }
 0x5b3   :  { %v2017_v4 = vadd.f32 %v2016_v8, %v3496_v51  ;;  %v2018_v33 = vpop.f32.mrb[49].mxu0 }
 0x5b4   :  { %v2019_v15 = vadd.f32 %v2018_v33, %v3496_v51  ;;  %v2020_v38 = vpop.f32.mrb[50].mxu0  ;;  %v2408_v51 = vld [vmem:[%s3679_s0 + $0x50] sm:$0xff] }
 0x5b5   :  { %v2035_v3 = vadd.f32 %v2406_v44, %v2017_v4  ;;  %v2021_v48 = vadd.f32 %v2020_v38, %v3499_v17  ;;  %v2022_v24 = vpop.f32.mrb[51].mxu0 }
 0x5b6   :  { %v2036_v41 = vadd.f32 %v2407_v35, %v2019_v15  ;;  %v2023_v13 = vadd.f32 %v2022_v24, %v3499_v17 }
 0x5b7   :  { %2044 = vst [vmem:[#allocation2 + $0x40] sm:$0xff] %v2035_v3  ;;  %v2037_v34 = vadd.f32 %v2408_v51, %v2021_v48 }
 0x5b8   :  { %2045 = vst.msk [vmem:[#allocation2 + $0x48] sm:$0xff] %vm79_vm0, %v2036_v41  ;;  %v2038_v61 = vadd.f32 %v2409_v30, %v2023_v13 }
 0x5b9   :  { %2046 = vst [vmem:[#allocation2 + $0x50] sm:$0xff] %v2037_v34 }
 0x5ba   :  { %2047 = vst.msk [vmem:[#allocation2 + $0x58] sm:$0xff] %vm79_vm0, %v2038_v61  ;;  %v2026_v46 = vpop.f32.mrb[52].mxu0 }
 0x5bb   :  { %v2027_v7 = vadd.f32 %v2026_v46, %v3517_v31  ;;  %v2028_v17 = vpop.f32.mrb[53].mxu0 }
 0x5bc   :  { %v2029_v2 = vadd.f32 %v2028_v17, %v3517_v31  ;;  %v2030_v47 = vpop.f32.mrb[54].mxu0  ;;  %v2412_v31 = vld [vmem:[%s3679_s0 + $0x70] sm:$0xff] }
 0x5bd   :  { %v2039_v29 = vadd.f32 %v2410_v22, %v2027_v7  ;;  %v2031_v25 = vadd.f32 %v2030_v47, %v3521_v39  ;;  %v2032_v28 = vpop.f32.mrb[55].mxu0 }
 0x5be   :  { %v2040_v43 = vadd.f32 %v2411_v21, %v2029_v2  ;;  %v2033_v56 = vadd.f32 %v2032_v28, %v3521_v39 }
 0x5bf   :  { %2048 = vst [vmem:[#allocation2 + $0x60] sm:$0xff] %v2039_v29  ;;  %v2041_v26 = vadd.f32 %v2412_v31, %v2031_v25 }
 0x5c0   :  { %2049 = vst.msk [vmem:[#allocation2 + $0x68] sm:$0xff] %vm79_vm0, %v2040_v43  ;;  %v2042_v45 = vadd.f32 %v2413_v55, %v2033_v56 }
 0x5c1   :  { %2050 = vst [vmem:[#allocation2 + $0x70] sm:$0xff] %v2041_v26 }
 0x5c2   :  { %2051 = vst.msk [vmem:[#allocation2 + $0x78] sm:$0xff] %vm79_vm0, %v2042_v45 }
 0x5c3   :  { %2425 = shalt.err (!%p2422_p4)
}
 0x5c4   :  { %s2426_s18 = scalar_lea.hbm %s3692_s13, 2048 }
 0x5c5   :  { %p2427_p5 = scmp.ne.s32.totalorder %s3692_s13, %s2426_s18  ;;  %p2430_p6 = scmp.lt.u32.totalorder %s2426_s18, %s3692_s13 }
 0x5c7   :  { %p2432_p7 = pnand %p2430_p6, %p2427_p5 }
 0x5c9   :  { %2435 = shalt.err (!%p2432_p7)
}
 0x5ca   :  { %s2440_s3 = smov 256   ;;  %s2441_s20 = smov 16  }
 0x5cb   :  { %2063 = dma.vmem_to_hbm [thread:$0]  %s2058_s28, 2048, %s3692_s13, [#allocation3], %s2440_s3, %s2440_s3, %s2441_s20  }
 0x5cc   :  { %2436 = dma.done.wait [#allocation3], 2048  }
 0x5cd   :  { %2437 = vsyncadd [#allocation3], 4294965248 }
 0x5ce   :  { %2067 = vsyncpa [#allocation3], 1 }

</bundles_post_ra>
